<compile_context>
chip_gen: v6e
topology: v6e:2x2x1
jax: 0.10.0
libtpu: 0.0.40
codegen_flags: <defaults>
</compile_context>

<pallas_src>
import functools

import jax
import jax.numpy as jnp
from jax import lax
from jax.experimental import pallas as pl
from jax.experimental.pallas import tpu as pltpu


def _attention_kernel(xq_ref, xkv_ref, wq_ref, wkv_ref, wproj_ref, bproj_ref,
                      o_ref, k_scratch, v_scratch,
                      *, num_heads: int, head_dim: int):
    # xq_ref:    (1, TQ, C)  bf16  query tile
    # xkv_ref:   (1, N,  C)  bf16  full sequence (for K/V projection)
    # wq_ref:    (C, C)      bf16  Q weight, transposed, 1/sqrt(Dh) folded in
    # wkv_ref:   (C, 2C)     bf16  K/V weights, transposed
    # wproj_ref: (C, C)      bf16  output-projection weight, transposed
    # bproj_ref: (1, C)      f32   output-projection bias
    # o_ref:     (1, TQ, C)  f32
    # k_scratch, v_scratch: (N, C) bf16, resident across the query-tile axis
    C = num_heads * head_dim
    qi = pl.program_id(1)

    # K/V for the whole sequence: computed once per batch element, reused for every
    # query tile of that batch element.
    @pl.when(qi == 0)
    def _():
        x_kv = xkv_ref[0]                                            # (N, C) bf16
        kv = jnp.dot(x_kv, wkv_ref[...],
                     preferred_element_type=jnp.float32)             # (N, 2C) f32 acc
        k_scratch[...] = kv[:, :C].astype(k_scratch.dtype)
        v_scratch[...] = kv[:, C:].astype(v_scratch.dtype)

    # Q projection for this tile (scale already folded into wq -> no per-head multiply).
    x_q = xq_ref[0]                                                  # (TQ, C) bf16
    q_all = jnp.dot(x_q, wq_ref[...],
                    preferred_element_type=jnp.float32).astype(jnp.bfloat16)

    k_all = k_scratch[...]                                           # (N, C) bf16
    v_all = v_scratch[...]                                           # (N, C) bf16

    tq = q_all.shape[0]
    acc = jnp.zeros((tq, C), dtype=jnp.float32)
    # Contract the last dims of q and k (q @ k^T) without materializing k.T.
    dnums = (((1,), (1,)), ((), ()))

    for h in range(num_heads):
        lo = h * head_dim
        hi = lo + head_dim
        q = q_all[:, lo:hi]                                          # (TQ, Dh) bf16
        k = k_all[:, lo:hi]                                          # (N,  Dh) bf16
        v = v_all[:, lo:hi]                                          # (N,  Dh) bf16

        s = lax.dot_general(q, k, dnums,
                            preferred_element_type=jnp.float32)      # (TQ, N) f32
        # Numerically-stable softmax, all element-wise math in f32; normalization is
        # deferred until after p @ v so the rescale touches (TQ, Dh), not (TQ, N).
        s_max = jnp.max(s, axis=-1, keepdims=True)
        p = jnp.exp(s - s_max)                                       # (TQ, N) f32
        denom = jnp.sum(p, axis=-1, keepdims=True)                   # (TQ, 1) f32

        o_h = jnp.dot(p.astype(jnp.bfloat16), v,
                      preferred_element_type=jnp.float32)            # (TQ, Dh) f32
        o_h = o_h * pl.reciprocal(denom, approx=True)                # EUP reciprocal

        # Fused output projection: accumulate this head's contribution directly into
        # the (TQ, C) accumulator — no head concat / relayout.
        acc = acc + jnp.dot(o_h.astype(jnp.bfloat16), wproj_ref[lo:hi, :],
                            preferred_element_type=jnp.float32)      # (TQ, C)

    o_ref[0] = (acc + bproj_ref[...]).astype(o_ref.dtype)

    # TODO(synk): attn_drop / proj_drop are identity (p=0.0 in the module); no dropout implemented.


def _pick_query_tile(n: int) -> int:
    for tq in (512, 256, 128, 64, 32, 16, 8):
        if n % tq == 0:
            return tq
    return n  # ragged / tiny N: single full-sequence tile


def attention_forward(x, w_qkv, w_proj, b_proj, *, num_heads: int):
    """x: (B, N, C).  w_qkv: (3C, C), w_proj: (C, C), b_proj: (C,) (PyTorch Linear layout)."""
    B, N, C = x.shape
    assert C % num_heads == 0
    head_dim = C // num_heads
    scale = head_dim ** (-0.5)

    # One-time parameter prep (wrapper side):
    #   * transpose the Linear weights so the kernel computes x @ W directly,
    #   * fold 1/sqrt(head_dim) into the Q rows of the qkv weight,
    #   * cast MXU operands to bf16 (f32 accumulation inside the kernel).
    w_q_t = (w_qkv[:C, :] * scale).T.astype(jnp.bfloat16)            # (C, C)
    w_kv_t = w_qkv[C:, :].T.astype(jnp.bfloat16)                     # (C, 2C)
    w_proj_t = w_proj.T.astype(jnp.bfloat16)                         # (C, C)
    b_proj_2d = b_proj.reshape(1, C).astype(jnp.float32)
    x_bf16 = x.astype(jnp.bfloat16)

    TQ = _pick_query_tile(N)
    NQ = N // TQ

    kernel = functools.partial(_attention_kernel,
                               num_heads=num_heads, head_dim=head_dim)

    return pl.pallas_call(
        kernel,
        out_shape=jax.ShapeDtypeStruct((B, N, C), x.dtype),
        grid_spec=pltpu.PrefetchScalarGridSpec(
            num_scalar_prefetch=0,
            grid=(B, NQ),
            in_specs=[
                pl.BlockSpec((1, TQ, C), lambda b, i: (b, i, 0)),    # x (query tile)
                pl.BlockSpec((1, N, C), lambda b, i: (b, 0, 0)),     # x (full seq, K/V)
                pl.BlockSpec((C, C), lambda b, i: (0, 0)),           # W_q^T (scaled)
                pl.BlockSpec((C, 2 * C), lambda b, i: (0, 0)),       # W_kv^T
                pl.BlockSpec((C, C), lambda b, i: (0, 0)),           # W_proj^T
                pl.BlockSpec((1, C), lambda b, i: (0, 0)),           # proj bias
            ],
            out_specs=pl.BlockSpec((1, TQ, C), lambda b, i: (b, i, 0)),
            scratch_shapes=[
                pltpu.VMEM((N, C), jnp.bfloat16),   # K, full sequence, resident
                pltpu.VMEM((N, C), jnp.bfloat16),   # V, full sequence, resident
            ],
        ),
        compiler_params=pltpu.CompilerParams(
            dimension_semantics=("parallel", "arbitrary"),
            vmem_limit_bytes=64 * 1024 * 1024,
        ),
    )(x_bf16, x_bf16, w_q_t, w_kv_t, w_proj_t, b_proj_2d)


def attention_reference(x, w_qkv, w_proj, b_proj, *, num_heads: int):
    """Pure-JAX f32 reference mirroring the PyTorch forward exactly."""
    B, N, C = x.shape
    head_dim = C // num_heads
    scale = head_dim ** (-0.5)
    qkv = x @ w_qkv.T                                   # (B, N, 3C)
    qkv = qkv.reshape(B, N, 3, num_heads, head_dim).transpose(2, 0, 3, 1, 4)
    q, k, v = qkv[0], qkv[1], qkv[2]                    # (B, H, N, Dh)
    q = q * scale
    attn = q @ jnp.swapaxes(k, -2, -1)                  # (B, H, N, N)
    attn = jax.nn.softmax(attn, axis=-1)
    out = attn @ v                                      # (B, H, N, Dh)
    out = jnp.swapaxes(out, 1, 2).reshape(B, N, C)
    return out @ w_proj.T + b_proj


if __name__ == "__main__":
    # Small shapes consistent with the module: B=2, N=8, C=32, heads=8 (head_dim=4).
    B, N, C, H = 2, 8, 32, 8

    key = jax.random.PRNGKey(0)
    kx, kqkv, kproj, kbias = jax.random.split(key, 4)

    x = jax.random.normal(kx, (B, N, C), dtype=jnp.float32)
    # PyTorch nn.Linear shapes: weight (out, in).
    w_qkv = jax.random.normal(kqkv, (3 * C, C), dtype=jnp.float32) * 0.05
    w_proj = jax.random.normal(kproj, (C, C), dtype=jnp.float32) * 0.05
    b_proj = jax.random.normal(kbias, (C,), dtype=jnp.float32) * 0.05

    out = attention_forward(x, w_qkv, w_proj, b_proj, num_heads=H)
    out = jax.block_until_ready(out)

    ref = attention_reference(x, w_qkv, w_proj, b_proj, num_heads=H)
    assert out.shape == (B, N, C)
    # bf16 MXU operands (f32 accumulation) -> compare against the f32 reference with a
    # correspondingly relaxed tolerance.
    assert jnp.allclose(out, ref, atol=2e-2, rtol=2e-2), "mismatch vs reference"

    print("KERNEL_OK")
</pallas_src>

<mosaic_0001>
module attributes {stable_mosaic.version = 11 : i64} {
  func.func @_attention_kernel(%arg0: i32, %arg1: i32, %arg2: memref<1x8x32xbf16, #tpu.memory_space<vmem>>, %arg3: memref<1x8x32xbf16, #tpu.memory_space<vmem>>, %arg4: memref<32x32xbf16, #tpu.memory_space<vmem>>, %arg5: memref<32x64xbf16, #tpu.memory_space<vmem>>, %arg6: memref<32x32xbf16, #tpu.memory_space<vmem>>, %arg7: memref<1x32xf32, #tpu.memory_space<vmem>>, %arg8: memref<1x8x32xf32, #tpu.memory_space<vmem>>, %arg9: memref<8x32xbf16, #tpu.memory_space<vmem>>, %arg10: memref<8x32xbf16, #tpu.memory_space<vmem>>) attributes {dimension_semantics = [#tpu.dimension_semantics<parallel>, #tpu.dimension_semantics<arbitrary>], iteration_bounds = array<i64: 2, 1>, scalar_prefetch = 0 : i64, scratch_operands = 2 : i64, tpu.core_type = #tpu.core_type<tc>, window_params = [{transform_indices = @transform_0, window_bounds = array<i64: 1, 8, 32>}, {transform_indices = @transform_1, window_bounds = array<i64: 1, 8, 32>}, {pipeline_mode = #tpu.pipeline_mode<synchronous>, transform_indices = @transform_2, window_bounds = array<i64: 32, 32>}, {pipeline_mode = #tpu.pipeline_mode<synchronous>, transform_indices = @transform_3, window_bounds = array<i64: 32, 64>}, {pipeline_mode = #tpu.pipeline_mode<synchronous>, transform_indices = @transform_4, window_bounds = array<i64: 32, 32>}, {pipeline_mode = #tpu.pipeline_mode<synchronous>, transform_indices = @transform_5, window_bounds = array<i64: 1, 32>}, {transform_indices = @transform_6, window_bounds = array<i64: 1, 8, 32>}]} {
    %c0_i32 = arith.constant 0 : i32
    %0 = arith.cmpi eq, %arg1, %c0_i32 : i32
    %1 = arith.extui %0 : i1 to i32
    %c0_i32_0 = arith.constant 0 : i32
    %2 = arith.cmpi ne, %1, %c0_i32_0 : i32
    scf.if %2 {
      %c0_64 = arith.constant 0 : index
      %c0_65 = arith.constant 0 : index
      %c0_66 = arith.constant 0 : index
      %177 = vector.load %arg3[%c0_64, %c0_65, %c0_66] : memref<1x8x32xbf16, #tpu.memory_space<vmem>>, vector<1x8x32xbf16>
      %178 = vector.shape_cast %177 : vector<1x8x32xbf16> to vector<8x32xbf16>
      %c0_67 = arith.constant 0 : index
      %c0_68 = arith.constant 0 : index
      %179 = vector.load %arg5[%c0_67, %c0_68] : memref<32x64xbf16, #tpu.memory_space<vmem>>, vector<32x64xbf16>
      %cst_69 = arith.constant dense<0.000000e+00> : vector<8x64xf32>
      %180 = tpu.matmul %178, %179, %cst_69 {dimension_numbers = #tpu.dot_dimension_numbers<[1], [0], [0], [1], [0, 0, 1, 1], [], []>} : vector<8x32xbf16>, vector<32x64xbf16>, vector<8x64xf32> -> vector<8x64xf32>
      %181 = vector.extract_strided_slice %180 {offsets = [0, 0], sizes = [8, 32], strides = [1, 1]} : vector<8x64xf32> to vector<8x32xf32>
      %182 = arith.truncf %181 : vector<8x32xf32> to vector<8x32xbf16>
      %c0_70 = arith.constant 0 : index
      %c0_71 = arith.constant 0 : index
      %183 = vector.load %arg9[%c0_70, %c0_71] : memref<8x32xbf16, #tpu.memory_space<vmem>>, vector<8x32xbf16>
      tpu.vector_store %arg9[%c0_70, %c0_71], %182 {strides = array<i32>} : memref<8x32xbf16, #tpu.memory_space<vmem>>, vector<8x32xbf16>,
      %184 = vector.extract_strided_slice %180 {offsets = [0, 32], sizes = [8, 32], strides = [1, 1]} : vector<8x64xf32> to vector<8x32xf32>
      %185 = arith.truncf %184 : vector<8x32xf32> to vector<8x32xbf16>
      %c0_72 = arith.constant 0 : index
      %c0_73 = arith.constant 0 : index
      %186 = vector.load %arg10[%c0_72, %c0_73] : memref<8x32xbf16, #tpu.memory_space<vmem>>, vector<8x32xbf16>
      tpu.vector_store %arg10[%c0_72, %c0_73], %185 {strides = array<i32>} : memref<8x32xbf16, #tpu.memory_space<vmem>>, vector<8x32xbf16>,
    } else {
    }
    %c0 = arith.constant 0 : index
    %c0_1 = arith.constant 0 : index
    %c0_2 = arith.constant 0 : index
    %3 = vector.load %arg2[%c0, %c0_1, %c0_2] : memref<1x8x32xbf16, #tpu.memory_space<vmem>>, vector<1x8x32xbf16>
    %4 = vector.shape_cast %3 : vector<1x8x32xbf16> to vector<8x32xbf16>
    %c0_3 = arith.constant 0 : index
    %c0_4 = arith.constant 0 : index
    %5 = vector.load %arg4[%c0_3, %c0_4] : memref<32x32xbf16, #tpu.memory_space<vmem>>, vector<32x32xbf16>
    %cst = arith.constant dense<0.000000e+00> : vector<8x32xf32>
    %6 = tpu.matmul %4, %5, %cst {dimension_numbers = #tpu.dot_dimension_numbers<[1], [0], [0], [1], [0, 0, 1, 1], [], []>} : vector<8x32xbf16>, vector<32x32xbf16>, vector<8x32xf32> -> vector<8x32xf32>
    %7 = arith.truncf %6 : vector<8x32xf32> to vector<8x32xbf16>
    %c0_5 = arith.constant 0 : index
    %c0_6 = arith.constant 0 : index
    %8 = vector.load %arg9[%c0_5, %c0_6] : memref<8x32xbf16, #tpu.memory_space<vmem>>, vector<8x32xbf16>
    %c0_7 = arith.constant 0 : index
    %c0_8 = arith.constant 0 : index
    %9 = vector.load %arg10[%c0_7, %c0_8] : memref<8x32xbf16, #tpu.memory_space<vmem>>, vector<8x32xbf16>
    %cst_9 = arith.constant 0.000000e+00 : f32
    %10 = vector.broadcast %cst_9 : f32 to vector<8x32xf32>
    %11 = vector.extract_strided_slice %7 {offsets = [0, 0], sizes = [8, 4], strides = [1, 1]} : vector<8x32xbf16> to vector<8x4xbf16>
    %12 = vector.extract_strided_slice %8 {offsets = [0, 0], sizes = [8, 4], strides = [1, 1]} : vector<8x32xbf16> to vector<8x4xbf16>
    %13 = vector.extract_strided_slice %9 {offsets = [0, 0], sizes = [8, 4], strides = [1, 1]} : vector<8x32xbf16> to vector<8x4xbf16>
    %cst_10 = arith.constant dense<0.000000e+00> : vector<8x8xf32>
    %14 = tpu.matmul %11, %12, %cst_10 {dimension_numbers = #tpu.dot_dimension_numbers<[1], [1], [0], [0], [0, 0, 1, 0], [], []>} : vector<8x4xbf16>, vector<8x4xbf16>, vector<8x8xf32> -> vector<8x8xf32>
    %cst_11 = arith.constant dense<0xFF800000> : vector<8xf32>
    %15 = vector.multi_reduction <maximumf>, %14, %cst_11 [1] : vector<8x8xf32> to vector<8xf32>
    %16 = vector.shape_cast %15 : vector<8xf32> to vector<8x1xf32>
    %17 = vector.broadcast %16 : vector<8x1xf32> to vector<8x8xf32>
    %18 = arith.subf %14, %17 : vector<8x8xf32>
    %19 = math.exp %18 : vector<8x8xf32>
    %cst_12 = arith.constant dense<0.000000e+00> : vector<8xf32>
    %20 = vector.multi_reduction <add>, %19, %cst_12 [1] : vector<8x8xf32> to vector<8xf32>
    %21 = vector.shape_cast %20 : vector<8xf32> to vector<8x1xf32>
    %22 = arith.truncf %19 : vector<8x8xf32> to vector<8x8xbf16>
    %cst_13 = arith.constant dense<0.000000e+00> : vector<8x4xf32>
    %23 = tpu.matmul %22, %13, %cst_13 {dimension_numbers = #tpu.dot_dimension_numbers<[1], [0], [0], [1], [0, 0, 1, 1], [], []>} : vector<8x8xbf16>, vector<8x4xbf16>, vector<8x4xf32> -> vector<8x4xf32>
    %24 = tpu.reciprocal %21 {approx = true} : vector<8x1xf32> -> vector<8x1xf32>
    %25 = vector.broadcast %24 : vector<8x1xf32> to vector<8x4xf32>
    %26 = arith.mulf %23, %25 : vector<8x4xf32>
    %27 = arith.truncf %26 : vector<8x4xf32> to vector<8x4xbf16>
    %c0_14 = arith.constant 0 : index
    %c0_15 = arith.constant 0 : index
    %28 = vector.load %arg6[%c0_14, %c0_15] : memref<32x32xbf16, #tpu.memory_space<vmem>>, vector<4x32xbf16>
    %cst_16 = arith.constant dense<0.000000e+00> : vector<8x32xf32>
    %29 = tpu.matmul %27, %28, %cst_16 {dimension_numbers = #tpu.dot_dimension_numbers<[1], [0], [0], [1], [0, 0, 1, 1], [], []>} : vector<8x4xbf16>, vector<4x32xbf16>, vector<8x32xf32> -> vector<8x32xf32>
    %30 = arith.addf %10, %29 : vector<8x32xf32>
    %31 = vector.extract_strided_slice %7 {offsets = [0, 4], sizes = [8, 4], strides = [1, 1]} : vector<8x32xbf16> to vector<8x4xbf16>
    %32 = vector.extract_strided_slice %8 {offsets = [0, 4], sizes = [8, 4], strides = [1, 1]} : vector<8x32xbf16> to vector<8x4xbf16>
    %33 = vector.extract_strided_slice %9 {offsets = [0, 4], sizes = [8, 4], strides = [1, 1]} : vector<8x32xbf16> to vector<8x4xbf16>
    %cst_17 = arith.constant dense<0.000000e+00> : vector<8x8xf32>
    %34 = tpu.matmul %31, %32, %cst_17 {dimension_numbers = #tpu.dot_dimension_numbers<[1], [1], [0], [0], [0, 0, 1, 0], [], []>} : vector<8x4xbf16>, vector<8x4xbf16>, vector<8x8xf32> -> vector<8x8xf32>
    %cst_18 = arith.constant dense<0xFF800000> : vector<8xf32>
    %35 = vector.multi_reduction <maximumf>, %34, %cst_18 [1] : vector<8x8xf32> to vector<8xf32>
    %36 = vector.shape_cast %35 : vector<8xf32> to vector<8x1xf32>
    %37 = vector.broadcast %36 : vector<8x1xf32> to vector<8x8xf32>
    %38 = arith.subf %34, %37 : vector<8x8xf32>
    %39 = math.exp %38 : vector<8x8xf32>
    %cst_19 = arith.constant dense<0.000000e+00> : vector<8xf32>
    %40 = vector.multi_reduction <add>, %39, %cst_19 [1] : vector<8x8xf32> to vector<8xf32>
    %41 = vector.shape_cast %40 : vector<8xf32> to vector<8x1xf32>
    %42 = arith.truncf %39 : vector<8x8xf32> to vector<8x8xbf16>
    %cst_20 = arith.constant dense<0.000000e+00> : vector<8x4xf32>
    %43 = tpu.matmul %42, %33, %cst_20 {dimension_numbers = #tpu.dot_dimension_numbers<[1], [0], [0], [1], [0, 0, 1, 1], [], []>} : vector<8x8xbf16>, vector<8x4xbf16>, vector<8x4xf32> -> vector<8x4xf32>
    %44 = tpu.reciprocal %41 {approx = true} : vector<8x1xf32> -> vector<8x1xf32>
    %45 = vector.broadcast %44 : vector<8x1xf32> to vector<8x4xf32>
    %46 = arith.mulf %43, %45 : vector<8x4xf32>
    %47 = arith.truncf %46 : vector<8x4xf32> to vector<8x4xbf16>
    %c4 = arith.constant 4 : index
    %c0_21 = arith.constant 0 : index
    %48 = vector.load %arg6[%c4, %c0_21] : memref<32x32xbf16, #tpu.memory_space<vmem>>, vector<4x32xbf16>
    %cst_22 = arith.constant dense<0.000000e+00> : vector<8x32xf32>
    %49 = tpu.matmul %47, %48, %cst_22 {dimension_numbers = #tpu.dot_dimension_numbers<[1], [0], [0], [1], [0, 0, 1, 1], [], []>} : vector<8x4xbf16>, vector<4x32xbf16>, vector<8x32xf32> -> vector<8x32xf32>
    %50 = arith.addf %30, %49 : vector<8x32xf32>
    %51 = vector.extract_strided_slice %7 {offsets = [0, 8], sizes = [8, 4], strides = [1, 1]} : vector<8x32xbf16> to vector<8x4xbf16>
    %52 = vector.extract_strided_slice %8 {offsets = [0, 8], sizes = [8, 4], strides = [1, 1]} : vector<8x32xbf16> to vector<8x4xbf16>
    %53 = vector.extract_strided_slice %9 {offsets = [0, 8], sizes = [8, 4], strides = [1, 1]} : vector<8x32xbf16> to vector<8x4xbf16>
    %cst_23 = arith.constant dense<0.000000e+00> : vector<8x8xf32>
    %54 = tpu.matmul %51, %52, %cst_23 {dimension_numbers = #tpu.dot_dimension_numbers<[1], [1], [0], [0], [0, 0, 1, 0], [], []>} : vector<8x4xbf16>, vector<8x4xbf16>, vector<8x8xf32> -> vector<8x8xf32>
    %cst_24 = arith.constant dense<0xFF800000> : vector<8xf32>
    %55 = vector.multi_reduction <maximumf>, %54, %cst_24 [1] : vector<8x8xf32> to vector<8xf32>
    %56 = vector.shape_cast %55 : vector<8xf32> to vector<8x1xf32>
    %57 = vector.broadcast %56 : vector<8x1xf32> to vector<8x8xf32>
    %58 = arith.subf %54, %57 : vector<8x8xf32>
    %59 = math.exp %58 : vector<8x8xf32>
    %cst_25 = arith.constant dense<0.000000e+00> : vector<8xf32>
    %60 = vector.multi_reduction <add>, %59, %cst_25 [1] : vector<8x8xf32> to vector<8xf32>
    %61 = vector.shape_cast %60 : vector<8xf32> to vector<8x1xf32>
    %62 = arith.truncf %59 : vector<8x8xf32> to vector<8x8xbf16>
    %cst_26 = arith.constant dense<0.000000e+00> : vector<8x4xf32>
    %63 = tpu.matmul %62, %53, %cst_26 {dimension_numbers = #tpu.dot_dimension_numbers<[1], [0], [0], [1], [0, 0, 1, 1], [], []>} : vector<8x8xbf16>, vector<8x4xbf16>, vector<8x4xf32> -> vector<8x4xf32>
    %64 = tpu.reciprocal %61 {approx = true} : vector<8x1xf32> -> vector<8x1xf32>
    %65 = vector.broadcast %64 : vector<8x1xf32> to vector<8x4xf32>
    %66 = arith.mulf %63, %65 : vector<8x4xf32>
    %67 = arith.truncf %66 : vector<8x4xf32> to vector<8x4xbf16>
    %c8 = arith.constant 8 : index
    %c0_27 = arith.constant 0 : index
    %68 = vector.load %arg6[%c8, %c0_27] : memref<32x32xbf16, #tpu.memory_space<vmem>>, vector<4x32xbf16>
    %cst_28 = arith.constant dense<0.000000e+00> : vector<8x32xf32>
    %69 = tpu.matmul %67, %68, %cst_28 {dimension_numbers = #tpu.dot_dimension_numbers<[1], [0], [0], [1], [0, 0, 1, 1], [], []>} : vector<8x4xbf16>, vector<4x32xbf16>, vector<8x32xf32> -> vector<8x32xf32>
    %70 = arith.addf %50, %69 : vector<8x32xf32>
    %71 = vector.extract_strided_slice %7 {offsets = [0, 12], sizes = [8, 4], strides = [1, 1]} : vector<8x32xbf16> to vector<8x4xbf16>
    %72 = vector.extract_strided_slice %8 {offsets = [0, 12], sizes = [8, 4], strides = [1, 1]} : vector<8x32xbf16> to vector<8x4xbf16>
    %73 = vector.extract_strided_slice %9 {offsets = [0, 12], sizes = [8, 4], strides = [1, 1]} : vector<8x32xbf16> to vector<8x4xbf16>
    %cst_29 = arith.constant dense<0.000000e+00> : vector<8x8xf32>
    %74 = tpu.matmul %71, %72, %cst_29 {dimension_numbers = #tpu.dot_dimension_numbers<[1], [1], [0], [0], [0, 0, 1, 0], [], []>} : vector<8x4xbf16>, vector<8x4xbf16>, vector<8x8xf32> -> vector<8x8xf32>
    %cst_30 = arith.constant dense<0xFF800000> : vector<8xf32>
    %75 = vector.multi_reduction <maximumf>, %74, %cst_30 [1] : vector<8x8xf32> to vector<8xf32>
    %76 = vector.shape_cast %75 : vector<8xf32> to vector<8x1xf32>
    %77 = vector.broadcast %76 : vector<8x1xf32> to vector<8x8xf32>
    %78 = arith.subf %74, %77 : vector<8x8xf32>
    %79 = math.exp %78 : vector<8x8xf32>
    %cst_31 = arith.constant dense<0.000000e+00> : vector<8xf32>
    %80 = vector.multi_reduction <add>, %79, %cst_31 [1] : vector<8x8xf32> to vector<8xf32>
    %81 = vector.shape_cast %80 : vector<8xf32> to vector<8x1xf32>
    %82 = arith.truncf %79 : vector<8x8xf32> to vector<8x8xbf16>
    %cst_32 = arith.constant dense<0.000000e+00> : vector<8x4xf32>
    %83 = tpu.matmul %82, %73, %cst_32 {dimension_numbers = #tpu.dot_dimension_numbers<[1], [0], [0], [1], [0, 0, 1, 1], [], []>} : vector<8x8xbf16>, vector<8x4xbf16>, vector<8x4xf32> -> vector<8x4xf32>
    %84 = tpu.reciprocal %81 {approx = true} : vector<8x1xf32> -> vector<8x1xf32>
    %85 = vector.broadcast %84 : vector<8x1xf32> to vector<8x4xf32>
    %86 = arith.mulf %83, %85 : vector<8x4xf32>
    %87 = arith.truncf %86 : vector<8x4xf32> to vector<8x4xbf16>
    %c12 = arith.constant 12 : index
    %c0_33 = arith.constant 0 : index
    %88 = vector.load %arg6[%c12, %c0_33] : memref<32x32xbf16, #tpu.memory_space<vmem>>, vector<4x32xbf16>
    %cst_34 = arith.constant dense<0.000000e+00> : vector<8x32xf32>
    %89 = tpu.matmul %87, %88, %cst_34 {dimension_numbers = #tpu.dot_dimension_numbers<[1], [0], [0], [1], [0, 0, 1, 1], [], []>} : vector<8x4xbf16>, vector<4x32xbf16>, vector<8x32xf32> -> vector<8x32xf32>
    %90 = arith.addf %70, %89 : vector<8x32xf32>
    %91 = vector.extract_strided_slice %7 {offsets = [0, 16], sizes = [8, 4], strides = [1, 1]} : vector<8x32xbf16> to vector<8x4xbf16>
    %92 = vector.extract_strided_slice %8 {offsets = [0, 16], sizes = [8, 4], strides = [1, 1]} : vector<8x32xbf16> to vector<8x4xbf16>
    %93 = vector.extract_strided_slice %9 {offsets = [0, 16], sizes = [8, 4], strides = [1, 1]} : vector<8x32xbf16> to vector<8x4xbf16>
    %cst_35 = arith.constant dense<0.000000e+00> : vector<8x8xf32>
    %94 = tpu.matmul %91, %92, %cst_35 {dimension_numbers = #tpu.dot_dimension_numbers<[1], [1], [0], [0], [0, 0, 1, 0], [], []>} : vector<8x4xbf16>, vector<8x4xbf16>, vector<8x8xf32> -> vector<8x8xf32>
    %cst_36 = arith.constant dense<0xFF800000> : vector<8xf32>
    %95 = vector.multi_reduction <maximumf>, %94, %cst_36 [1] : vector<8x8xf32> to vector<8xf32>
    %96 = vector.shape_cast %95 : vector<8xf32> to vector<8x1xf32>
    %97 = vector.broadcast %96 : vector<8x1xf32> to vector<8x8xf32>
    %98 = arith.subf %94, %97 : vector<8x8xf32>
    %99 = math.exp %98 : vector<8x8xf32>
    %cst_37 = arith.constant dense<0.000000e+00> : vector<8xf32>
    %100 = vector.multi_reduction <add>, %99, %cst_37 [1] : vector<8x8xf32> to vector<8xf32>
    %101 = vector.shape_cast %100 : vector<8xf32> to vector<8x1xf32>
    %102 = arith.truncf %99 : vector<8x8xf32> to vector<8x8xbf16>
    %cst_38 = arith.constant dense<0.000000e+00> : vector<8x4xf32>
    %103 = tpu.matmul %102, %93, %cst_38 {dimension_numbers = #tpu.dot_dimension_numbers<[1], [0], [0], [1], [0, 0, 1, 1], [], []>} : vector<8x8xbf16>, vector<8x4xbf16>, vector<8x4xf32> -> vector<8x4xf32>
    %104 = tpu.reciprocal %101 {approx = true} : vector<8x1xf32> -> vector<8x1xf32>
    %105 = vector.broadcast %104 : vector<8x1xf32> to vector<8x4xf32>
    %106 = arith.mulf %103, %105 : vector<8x4xf32>
    %107 = arith.truncf %106 : vector<8x4xf32> to vector<8x4xbf16>
    %c16 = arith.constant 16 : index
    %c0_39 = arith.constant 0 : index
    %108 = vector.load %arg6[%c16, %c0_39] : memref<32x32xbf16, #tpu.memory_space<vmem>>, vector<4x32xbf16>
    %cst_40 = arith.constant dense<0.000000e+00> : vector<8x32xf32>
    %109 = tpu.matmul %107, %108, %cst_40 {dimension_numbers = #tpu.dot_dimension_numbers<[1], [0], [0], [1], [0, 0, 1, 1], [], []>} : vector<8x4xbf16>, vector<4x32xbf16>, vector<8x32xf32> -> vector<8x32xf32>
    %110 = arith.addf %90, %109 : vector<8x32xf32>
    %111 = vector.extract_strided_slice %7 {offsets = [0, 20], sizes = [8, 4], strides = [1, 1]} : vector<8x32xbf16> to vector<8x4xbf16>
    %112 = vector.extract_strided_slice %8 {offsets = [0, 20], sizes = [8, 4], strides = [1, 1]} : vector<8x32xbf16> to vector<8x4xbf16>
    %113 = vector.extract_strided_slice %9 {offsets = [0, 20], sizes = [8, 4], strides = [1, 1]} : vector<8x32xbf16> to vector<8x4xbf16>
    %cst_41 = arith.constant dense<0.000000e+00> : vector<8x8xf32>
    %114 = tpu.matmul %111, %112, %cst_41 {dimension_numbers = #tpu.dot_dimension_numbers<[1], [1], [0], [0], [0, 0, 1, 0], [], []>} : vector<8x4xbf16>, vector<8x4xbf16>, vector<8x8xf32> -> vector<8x8xf32>
    %cst_42 = arith.constant dense<0xFF800000> : vector<8xf32>
    %115 = vector.multi_reduction <maximumf>, %114, %cst_42 [1] : vector<8x8xf32> to vector<8xf32>
    %116 = vector.shape_cast %115 : vector<8xf32> to vector<8x1xf32>
    %117 = vector.broadcast %116 : vector<8x1xf32> to vector<8x8xf32>
    %118 = arith.subf %114, %117 : vector<8x8xf32>
    %119 = math.exp %118 : vector<8x8xf32>
    %cst_43 = arith.constant dense<0.000000e+00> : vector<8xf32>
    %120 = vector.multi_reduction <add>, %119, %cst_43 [1] : vector<8x8xf32> to vector<8xf32>
    %121 = vector.shape_cast %120 : vector<8xf32> to vector<8x1xf32>
    %122 = arith.truncf %119 : vector<8x8xf32> to vector<8x8xbf16>
    %cst_44 = arith.constant dense<0.000000e+00> : vector<8x4xf32>
    %123 = tpu.matmul %122, %113, %cst_44 {dimension_numbers = #tpu.dot_dimension_numbers<[1], [0], [0], [1], [0, 0, 1, 1], [], []>} : vector<8x8xbf16>, vector<8x4xbf16>, vector<8x4xf32> -> vector<8x4xf32>
    %124 = tpu.reciprocal %121 {approx = true} : vector<8x1xf32> -> vector<8x1xf32>
    %125 = vector.broadcast %124 : vector<8x1xf32> to vector<8x4xf32>
    %126 = arith.mulf %123, %125 : vector<8x4xf32>
    %127 = arith.truncf %126 : vector<8x4xf32> to vector<8x4xbf16>
    %c20 = arith.constant 20 : index
    %c0_45 = arith.constant 0 : index
    %128 = vector.load %arg6[%c20, %c0_45] : memref<32x32xbf16, #tpu.memory_space<vmem>>, vector<4x32xbf16>
    %cst_46 = arith.constant dense<0.000000e+00> : vector<8x32xf32>
    %129 = tpu.matmul %127, %128, %cst_46 {dimension_numbers = #tpu.dot_dimension_numbers<[1], [0], [0], [1], [0, 0, 1, 1], [], []>} : vector<8x4xbf16>, vector<4x32xbf16>, vector<8x32xf32> -> vector<8x32xf32>
    %130 = arith.addf %110, %129 : vector<8x32xf32>
    %131 = vector.extract_strided_slice %7 {offsets = [0, 24], sizes = [8, 4], strides = [1, 1]} : vector<8x32xbf16> to vector<8x4xbf16>
    %132 = vector.extract_strided_slice %8 {offsets = [0, 24], sizes = [8, 4], strides = [1, 1]} : vector<8x32xbf16> to vector<8x4xbf16>
    %133 = vector.extract_strided_slice %9 {offsets = [0, 24], sizes = [8, 4], strides = [1, 1]} : vector<8x32xbf16> to vector<8x4xbf16>
    %cst_47 = arith.constant dense<0.000000e+00> : vector<8x8xf32>
    %134 = tpu.matmul %131, %132, %cst_47 {dimension_numbers = #tpu.dot_dimension_numbers<[1], [1], [0], [0], [0, 0, 1, 0], [], []>} : vector<8x4xbf16>, vector<8x4xbf16>, vector<8x8xf32> -> vector<8x8xf32>
    %cst_48 = arith.constant dense<0xFF800000> : vector<8xf32>
    %135 = vector.multi_reduction <maximumf>, %134, %cst_48 [1] : vector<8x8xf32> to vector<8xf32>
    %136 = vector.shape_cast %135 : vector<8xf32> to vector<8x1xf32>
    %137 = vector.broadcast %136 : vector<8x1xf32> to vector<8x8xf32>
    %138 = arith.subf %134, %137 : vector<8x8xf32>
    %139 = math.exp %138 : vector<8x8xf32>
    %cst_49 = arith.constant dense<0.000000e+00> : vector<8xf32>
    %140 = vector.multi_reduction <add>, %139, %cst_49 [1] : vector<8x8xf32> to vector<8xf32>
    %141 = vector.shape_cast %140 : vector<8xf32> to vector<8x1xf32>
    %142 = arith.truncf %139 : vector<8x8xf32> to vector<8x8xbf16>
    %cst_50 = arith.constant dense<0.000000e+00> : vector<8x4xf32>
    %143 = tpu.matmul %142, %133, %cst_50 {dimension_numbers = #tpu.dot_dimension_numbers<[1], [0], [0], [1], [0, 0, 1, 1], [], []>} : vector<8x8xbf16>, vector<8x4xbf16>, vector<8x4xf32> -> vector<8x4xf32>
    %144 = tpu.reciprocal %141 {approx = true} : vector<8x1xf32> -> vector<8x1xf32>
    %145 = vector.broadcast %144 : vector<8x1xf32> to vector<8x4xf32>
    %146 = arith.mulf %143, %145 : vector<8x4xf32>
    %147 = arith.truncf %146 : vector<8x4xf32> to vector<8x4xbf16>
    %c24 = arith.constant 24 : index
    %c0_51 = arith.constant 0 : index
    %148 = vector.load %arg6[%c24, %c0_51] : memref<32x32xbf16, #tpu.memory_space<vmem>>, vector<4x32xbf16>
    %cst_52 = arith.constant dense<0.000000e+00> : vector<8x32xf32>
    %149 = tpu.matmul %147, %148, %cst_52 {dimension_numbers = #tpu.dot_dimension_numbers<[1], [0], [0], [1], [0, 0, 1, 1], [], []>} : vector<8x4xbf16>, vector<4x32xbf16>, vector<8x32xf32> -> vector<8x32xf32>
    %150 = arith.addf %130, %149 : vector<8x32xf32>
    %151 = vector.extract_strided_slice %7 {offsets = [0, 28], sizes = [8, 4], strides = [1, 1]} : vector<8x32xbf16> to vector<8x4xbf16>
    %152 = vector.extract_strided_slice %8 {offsets = [0, 28], sizes = [8, 4], strides = [1, 1]} : vector<8x32xbf16> to vector<8x4xbf16>
    %153 = vector.extract_strided_slice %9 {offsets = [0, 28], sizes = [8, 4], strides = [1, 1]} : vector<8x32xbf16> to vector<8x4xbf16>
    %cst_53 = arith.constant dense<0.000000e+00> : vector<8x8xf32>
    %154 = tpu.matmul %151, %152, %cst_53 {dimension_numbers = #tpu.dot_dimension_numbers<[1], [1], [0], [0], [0, 0, 1, 0], [], []>} : vector<8x4xbf16>, vector<8x4xbf16>, vector<8x8xf32> -> vector<8x8xf32>
    %cst_54 = arith.constant dense<0xFF800000> : vector<8xf32>
    %155 = vector.multi_reduction <maximumf>, %154, %cst_54 [1] : vector<8x8xf32> to vector<8xf32>
    %156 = vector.shape_cast %155 : vector<8xf32> to vector<8x1xf32>
    %157 = vector.broadcast %156 : vector<8x1xf32> to vector<8x8xf32>
    %158 = arith.subf %154, %157 : vector<8x8xf32>
    %159 = math.exp %158 : vector<8x8xf32>
    %cst_55 = arith.constant dense<0.000000e+00> : vector<8xf32>
    %160 = vector.multi_reduction <add>, %159, %cst_55 [1] : vector<8x8xf32> to vector<8xf32>
    %161 = vector.shape_cast %160 : vector<8xf32> to vector<8x1xf32>
    %162 = arith.truncf %159 : vector<8x8xf32> to vector<8x8xbf16>
    %cst_56 = arith.constant dense<0.000000e+00> : vector<8x4xf32>
    %163 = tpu.matmul %162, %153, %cst_56 {dimension_numbers = #tpu.dot_dimension_numbers<[1], [0], [0], [1], [0, 0, 1, 1], [], []>} : vector<8x8xbf16>, vector<8x4xbf16>, vector<8x4xf32> -> vector<8x4xf32>
    %164 = tpu.reciprocal %161 {approx = true} : vector<8x1xf32> -> vector<8x1xf32>
    %165 = vector.broadcast %164 : vector<8x1xf32> to vector<8x4xf32>
    %166 = arith.mulf %163, %165 : vector<8x4xf32>
    %167 = arith.truncf %166 : vector<8x4xf32> to vector<8x4xbf16>
    %c28 = arith.constant 28 : index
    %c0_57 = arith.constant 0 : index
    %168 = vector.load %arg6[%c28, %c0_57] : memref<32x32xbf16, #tpu.memory_space<vmem>>, vector<4x32xbf16>
    %cst_58 = arith.constant dense<0.000000e+00> : vector<8x32xf32>
    %169 = tpu.matmul %167, %168, %cst_58 {dimension_numbers = #tpu.dot_dimension_numbers<[1], [0], [0], [1], [0, 0, 1, 1], [], []>} : vector<8x4xbf16>, vector<4x32xbf16>, vector<8x32xf32> -> vector<8x32xf32>
    %170 = arith.addf %150, %169 : vector<8x32xf32>
    %c0_59 = arith.constant 0 : index
    %c0_60 = arith.constant 0 : index
    %171 = vector.load %arg7[%c0_59, %c0_60] : memref<1x32xf32, #tpu.memory_space<vmem>>, vector<1x32xf32>
    %172 = vector.broadcast %171 : vector<1x32xf32> to vector<8x32xf32>
    %173 = arith.addf %170, %172 : vector<8x32xf32>
    %c0_61 = arith.constant 0 : index
    %c0_62 = arith.constant 0 : index
    %c0_63 = arith.constant 0 : index
    %174 = vector.load %arg8[%c0_61, %c0_62, %c0_63] : memref<1x8x32xf32, #tpu.memory_space<vmem>>, vector<1x8x32xf32>
    %175 = vector.shape_cast %174 : vector<1x8x32xf32> to vector<8x32xf32>
    %176 = vector.shape_cast %173 : vector<8x32xf32> to vector<1x8x32xf32>
    tpu.vector_store %arg8[%c0_61, %c0_62, %c0_63], %176 {strides = array<i32>} : memref<1x8x32xf32, #tpu.memory_space<vmem>>, vector<1x8x32xf32>,
    return
  }
  func.func @transform_0(%arg0: i32, %arg1: i32) -> (i32, i32, i32) {
    %c0_i32 = arith.constant 0 : i32
    %c0_i32_0 = arith.constant 0 : i32
    return %arg0, %arg1, %c0_i32 : i32, i32, i32
  }
  func.func @transform_1(%arg0: i32, %arg1: i32) -> (i32, i32, i32) {
    %c0_i32 = arith.constant 0 : i32
    %c0_i32_0 = arith.constant 0 : i32
    %c0_i32_1 = arith.constant 0 : i32
    return %arg0, %c0_i32, %c0_i32_0 : i32, i32, i32
  }
  func.func @transform_2(%arg0: i32, %arg1: i32) -> (i32, i32) {
    %c0_i32 = arith.constant 0 : i32
    %c0_i32_0 = arith.constant 0 : i32
    %c0_i32_1 = arith.constant 0 : i32
    return %c0_i32, %c0_i32_0 : i32, i32
  }
  func.func @transform_3(%arg0: i32, %arg1: i32) -> (i32, i32) {
    %c0_i32 = arith.constant 0 : i32
    %c0_i32_0 = arith.constant 0 : i32
    %c0_i32_1 = arith.constant 0 : i32
    return %c0_i32, %c0_i32_0 : i32, i32
  }
  func.func @transform_4(%arg0: i32, %arg1: i32) -> (i32, i32) {
    %c0_i32 = arith.constant 0 : i32
    %c0_i32_0 = arith.constant 0 : i32
    %c0_i32_1 = arith.constant 0 : i32
    return %c0_i32, %c0_i32_0 : i32, i32
  }
  func.func @transform_5(%arg0: i32, %arg1: i32) -> (i32, i32) {
    %c0_i32 = arith.constant 0 : i32
    %c0_i32_0 = arith.constant 0 : i32
    %c0_i32_1 = arith.constant 0 : i32
    return %c0_i32, %c0_i32_0 : i32, i32
  }
  func.func @transform_6(%arg0: i32, %arg1: i32) -> (i32, i32, i32) {
    %c0_i32 = arith.constant 0 : i32
    %c0_i32_0 = arith.constant 0 : i32
    return %arg0, %arg1, %c0_i32 : i32, i32, i32
  }
}

</mosaic_0001>

<bundles_post_ra>
// kernel: tpu_custom_call.1
= control target key start
LH: loop header
LB: loop body
LE: loop exit
PB: predicated region body
PF: predicated region fallthrough
CT: control target
= control target key end

     0   :  { %s3080_s0 = inlined_call_operand.hbm [shape: bf16[2,8,32], index: 0, kind: input, shape index: {}]   ;;  %s3081_s1 = inlined_call_operand.hbm [shape: bf16[2,8,32], index: 1, kind: input, shape index: {}]   ;;  %s3082_s2 = inlined_call_operand.hbm [shape: bf16[32,32], index: 2, kind: input, shape index: {}]   ;;  %s3083_s3 = inlined_call_operand.hbm [shape: bf16[32,64], index: 3, kind: input, shape index: {}]   ;;  %s3084_s4 = inlined_call_operand.hbm [shape: bf16[32,32], index: 4, kind: input, shape index: {}]   ;;  %s3085_s5 = inlined_call_operand.vmem [shape: f32[1,32], index: 5, kind: input, shape index: {}]   ;;  %s3086_s6 = inlined_call_operand.hbm [shape: f32[2,8,32], index: 6, kind: output, shape index: {}]  }
   0x1   :  { %3089 = sst [smem:[#allocation19_spill]] %s3080_s0 }
   0x2   :  { %3090 = sst [smem:[#allocation20_spill]] %s3082_s2 }
   0x3   :  { %3091 = sst [smem:[#allocation21_spill]] %s3083_s3 }
   0x4   :  { %3092 = sst [smem:[#allocation22_spill]] %s3084_s4 }
   0x5   :  { %11 = vsyncpa [#allocation5], 0 }
   0x6   :  { %13 = vsyncpa [#allocation5 + $0x1], 0 }
   0x7   :  { %14 = vsyncpa [#allocation8], 0 }
   0x8   :  { %16 = vsyncpa [#allocation8 + $0x1], 0 }
   0x9   :  { %17 = vsyncpa [#allocation11], 0 }
   0xa   :  { %18 = vsyncpa [#allocation6], 0 }
   0xb   :  { %20 = vsyncpa [#allocation6 + $0x1], 0  ;;  %s2658_s21 = smov 0   ;;  %s2660_s22 = smov 0  }
   0xc   :  { %s2662_s23 = smov 0   ;;  %s2664_s24 = smov 0  }
   0xd   :  { %s2666_s25 = smov 0   ;;  %s2668_s26 = smov 0  }
   0xe LB: > { %s2689_s27 = sadd.s32 4294967295, %s2603_s26   ;;  %s1951_s28 = sadd.s32 4294967294, %s2603_s26   ;;  %s2603_s26 = sphi %s2668_s26, %s26_s26   ;;  %s2599_s25 = sphi %s2666_s25, %s3115_s25   ;;  %s2595_s24 = sphi %s2664_s24, %s3114_s24   ;;  %s2591_s23 = sphi %s2662_s23, %s3113_s23   ;;  %s2587_s22 = sphi %s2660_s22, %s3112_s22   ;;  %s2583_s21 = sphi %s2658_s21, %s3111_s21  }
   0xf   : > { %p60_p0 = scmp.ne.s32.totalorder %s2587_s22, %s2583_s21  ;;  %p3087_p1 = scmp.eq.s32.totalorder %s2689_s27, 0 }
  0x10   : > { %p202_p3 = scmp.eq.s32.totalorder %s1951_s28, 1  ;;  %p1952_p5 = scmp.ge.s32.totalorder %s2603_s26, 1 }
  0x11   : > { %p2698_p4 = por %p3087_p1, %p60_p0  ;;  %p209_p7 = scmp.lt.s32.totalorder %s2603_s26, 3 }
  0x12   : > { %p2703_p6 = por %p202_p3, %p60_p0  ;;  %s2605_s8 = smov [#allocation9]  }
  0x13   : > { %s3093_s29 = scalar_select %p2698_p4, 1, 0 }
  0x14   : > { %s3094_s30 = scalar_select %p2703_p6, 1, 0 }
  0x15   : > { %p2708_p8 = pnand %p1952_p5, %p209_p7  ;;  %s221_s9 = sshll.u32 %s2605_s8, 4  ;;  %s222_s9 = int_to_ptr.vmem [resolvable:$true] %s221_s9 }
  0x16   : > { %s2606_s11 = smov [#allocation10]   ;;  %s2607_s13 = smov [#allocation12]  }
  0x17   : > { %p2243_p9 = pneg %p2708_p8  ;;  %s234_s12 = sshll.u32 %s2606_s11, 4  ;;  %s235_s12 = int_to_ptr.vmem [resolvable:$true] %s234_s12 }
  0x18   : > { %s247_s14 = sshll.u32 %s2607_s13, 4  ;;  %s2388_s15 = scalar_lea.vmem %s222_s9, 256  ;;  %s248_s14 = int_to_ptr.vmem [resolvable:$true] %s247_s14 }
  0x19   : > { %p2717_p11 = pnand %p2243_p9, %p3087_p1  ;;  %p2389_p13 = scmp.ne.s32.totalorder %s222_s9, %s2388_s15 }
  0x1a   : > { %p2396_p5 = scmp.lt.s32.totalorder %s222_s9, %s222_s9  ;;  %p2397_p7 = scmp.lt.s32.totalorder %s2388_s15, %s2388_s15 }
  0x1b   : > { %p2379_p12 = pneg %p2717_p11 }
  0x1c   : > { %p2398_p9 = por %p2397_p7, %p2396_p5 }
  0x1d   : > { %p2391_p0 = pnand %p2389_p13, %p2379_p12 }
  0x1f   : > { %p2392_p3 = pneg %p2391_p0 }
  0x21   : > { %p2399_p10 = pnand %p2398_p9, %p2392_p3 }
  0x23   : > { %2402 = shalt.err (!%p2399_p10)
}
  0x24   : > { %s2608_s16 = smov 64   ;;  %s2609_s17 = smov 4  }
  0x25   : > { %s3097_s2 = sld [smem:[#allocation20_spill]]  ;;  %s2414_s20 = scalar_lea.vmem %s235_s12, 256 }
  0x26   : > { %p2415_p1 = scmp.ne.s32.totalorder %s235_s12, %s2414_s20  ;;  %p2422_p2 = scmp.lt.s32.totalorder %s235_s12, %s235_s12 }
  0x27   : > { %p2423_p6 = scmp.lt.s32.totalorder %s2414_s20, %s2414_s20 }
  0x28   : > { %p2417_p13 = pnand %p2415_p1, %p2379_p12 }
  0x29   : > { %p2424_p5 = por %p2423_p6, %p2422_p2 }
  0x2a   : > { %p2418_p0 = pneg %p2417_p13 }
  0x2b   : > { %2246 = dma.hbm_to_vmem [thread:$0]  (!%p2717_p11), %s3097_s2, 256, %s222_s9, [#allocation8], %s2608_s16, %s2608_s16, %s2609_s17  }
  0x2c   : > { %p2425_p3 = pnand %p2424_p5, %p2418_p0 }
  0x2e   : > { %2428 = shalt.err (!%p2425_p3)
}
  0x2f   : > { %s3098_s3 = sld [smem:[#allocation21_spill]]  ;;  %s2440_s9 = scalar_lea.vmem %s248_s14, 256 }
  0x30   : > { %p2441_p10 = scmp.ne.s32.totalorder %s248_s14, %s2440_s9  ;;  %p2448_p9 = scmp.lt.s32.totalorder %s248_s14, %s248_s14 }
  0x31   : > { %p2449_p13 = scmp.lt.s32.totalorder %s2440_s9, %s2440_s9 }
  0x32   : > { %p2443_p7 = pnand %p2441_p10, %p2379_p12 }
  0x33   : > { %p2450_p4 = por %p2449_p13, %p2448_p9 }
  0x34   : > { %p2444_p1 = pneg %p2443_p7 }
  0x35   : > { %2249 = dma.hbm_to_vmem [thread:$0]  (!%p2717_p11), %s3098_s3, 256, %s235_s12, [#allocation11], %s2608_s16, %s2608_s16, %s2609_s17  }
  0x36   : > { %p2451_p2 = pnand %p2450_p4, %p2444_p1 }
  0x38   : > { %2454 = shalt.err (!%p2451_p2)
}
  0x39   : > { %s3099_s4 = sld [smem:[#allocation22_spill]]  ;;  %s47_s12 = sadd.s32 1, %s2591_s23 }
  0x3a   : > { %s38_s15 = sadd.s32 1, %s2599_s25  ;;  %p54_p4 = scmp.ne.s32.totalorder %s2591_s23, %s2587_s22 }
  0x3b   : > { %p40_p6 = scmp.ge.s32.totalorder %s38_s15, 2  ;;  %p55_p12 = scmp.eq.s32.totalorder %s2603_s26, 0 }
  0x3c   : > { %p3100_p0 = scmp.eq.s32.totalorder %s2689_s27, 1  ;;  %p2267_p3 = scmp.lt.s32.totalorder %s2603_s26, 2 }
  0x3d   : > { %s3117_s15 = smov (%p40_p6, %s38_s15), 0  ;;  %p56_p10 = por %p55_p12, %p54_p4 }
  0x3e   : > { %p2754_p5 = por %p3100_p0, %p54_p4  ;;  %s264_s18 = sand.u32 1, %s2591_s23  }
  0x3f   : > { %2252 = dma.hbm_to_vmem [thread:$0]  (!%p2717_p11), %s3099_s4, 256, %s248_s14, [#allocation11], %s2608_s16, %s2608_s16, %s2609_s17  }
  0x40   : > { %s42_s19 = ssub.s32 %s2599_s25, %s3117_s15  ;;  %s1957_s14 = sshll.u32 %s264_s18, 2 }
  0x41   : > { %p45_p11 = scmp.eq.s32.totalorder %s42_s19, 0  ;;  %s1958_s16 = sshll.u32 %s2599_s25, 6 }
  0x42   : > { %s3102_s0 = sld [smem:[#allocation19_spill]]  ;;  %s268_s9 = scalar_lea.vmem [#allocation4], %s1957_s14 }
  0x43   : > { %s2766_s17 = scalar_select %p45_p11, %s2591_s23, %s47_s12  }
  0x44   : > { %s276_s11 = sshll.u32 %s268_s9, 4  ;;  %p2773_p7 = pnand %p2267_p3, %p56_p10  ;;  %s277_s11 = int_to_ptr.vmem [resolvable:$true] %s276_s11 }
  0x45   : > { %s2780_s19 = scalar_lea.hbm %s3081_s1, %s1958_s16  ;;  %s283_s12 = sand.u32 1, %s2603_s26  }
  0x46   : > { %s265_s4 = scalar_lea.sflag [#allocation5], %s264_s18  ;;  %p2457_p1 = pneg %p2773_p7 }
  0x47   : > { %s2468_s20 = scalar_lea.vmem %s277_s11, 64  ;;  %s2610_s28 = smov [#allocation4]  }
  0x48   : > { %s274_s8 = scalar_lea.hbm %s3102_s0, %s1958_s16  ;;  %p2469_p9 = scmp.ne.s32.totalorder %s277_s11, %s2468_s20 }
  0x49   : > { %s2473_s9 = sshll.u32 %s2610_s28, 4  ;;  %s2474_s9 = int_to_ptr.vmem [resolvable:$false] %s2473_s9 }
  0x4a   : > { %p2471_p13 = pnand %p2469_p9, %p2457_p1  ;;  %s2475_s0 = scalar_lea.vmem %s2474_s9, 128 }
  0x4b   : > { %p2476_p4 = scmp.lt.s32.totalorder %s277_s11, %s2474_s9  ;;  %p2477_p6 = scmp.lt.s32.totalorder %s2475_s0, %s2468_s20 }
  0x4c   : > { %p2472_p2 = pneg %p2471_p13 }
  0x4d   : > { %p2478_p12 = por %p2477_p6, %p2476_p4 }
  0x4f   : > { %p2479_p0 = pnand %p2478_p12, %p2472_p2 }
  0x51   : > { %2482 = shalt.err (!%p2479_p0)
}
  0x52   : > { %2256 = dma.hbm_to_vmem [thread:$0]  (!%p2773_p7), %s274_s8, 64, %s277_s11, %s265_s4  }
  0x53   : > { %s287_s2 = scalar_lea.vmem [#allocation7], %s1957_s14  ;;  %s284_s18 = scalar_lea.sflag [#allocation8], %s283_s12 }
  0x54   : > { %s294_s3 = sshll.u32 %s287_s2, 4  ;;  %s2611_s28 = smov [#allocation7]   ;;  %s295_s3 = int_to_ptr.vmem [resolvable:$true] %s294_s3 }
  0x55   : > { %s2496_s16 = scalar_lea.vmem %s295_s3, 64  ;;  %s2501_s9 = sshll.u32 %s2611_s28, 4  ;;  %s2502_s9 = int_to_ptr.vmem [resolvable:$false] %s2501_s9 }
  0x56   : > { %p2497_p3 = scmp.ne.s32.totalorder %s295_s3, %s2496_s16  ;;  %s2503_s0 = scalar_lea.vmem %s2502_s9, 128 }
  0x57   : > { %p2504_p9 = scmp.lt.s32.totalorder %s295_s3, %s2502_s9  ;;  %p2505_p13 = scmp.lt.s32.totalorder %s2503_s0, %s2496_s16 }
  0x58   : > { %p2499_p10 = pnand %p2497_p3, %p2457_p1 }
  0x59   : > { %p2506_p2 = por %p2505_p13, %p2504_p9 }
  0x5a   : > { %p2500_p11 = pneg %p2499_p10 }
  0x5c   : > { %p2507_p4 = pnand %p2506_p2, %p2500_p11 }
  0x5e   : > { %2510 = shalt.err (!%p2507_p4)
}
  0x5f   : > { %2259 = dma.hbm_to_vmem [thread:$0]  (!%p2773_p7), %s2780_s19, 64, %s295_s3, %s284_s18  }
  0x60   : > { %303 = sbr.rel (%p2708_p8) target bundleno = 3567 (0xdef), region = 44  ;;  %s2799_s4 = sand.u32 (!%p2708_p8), 1, %s2587_s22  }
  0x61   : > { %s1962_s14 = sshll.u32 (!%p2708_p8), %s2799_s4, 2  ;;  %s306_s8 = scalar_lea.sflag (!%p2708_p8), [#allocation5], %s2799_s4 }
  0x62   : > { %s2803_s11 = scalar_lea.vmem (!%p2708_p8), [#allocation4], %s1962_s14  ;;  %p3104_p1 = scmp.ne.s32.totalorder (!%p2708_p8), %s3093_s29, 0 }
  0x65   : > { %2562 = dma.done.wait (%p3104_p1), %s306_s8, 64  }
  0x66   : > { %2564 = vsyncadd (%p3104_p1), %s306_s8, 4294967232  ;;  %s314_s13 = sand.u32 1, %s2689_s27   ;;  %s318_s19 = scalar_lea.vmem [#allocation7], %s1962_s14 }
  0x67   : > { %s315_s7 = scalar_lea.sflag [#allocation8], %s314_s13 }
  0x68   : > { %2566 = dma.done.wait (%p3104_p1), %s315_s7, 64  }
  0x69   : > { %2568 = vsyncadd (%p3104_p1), %s315_s7, 4294967232  ;;  %p3105_p8 = scmp.eq.s32.totalorder %s2689_s27, 0 }
  0x6b   : > { %2570 = dma.done.wait (%p3105_p8), [#allocation8], 256   ;;  %p3106_p7 = pmov %p3105_p8 }
  0x6d   : > { %2572 = vsyncadd (%p3106_p7), [#allocation8], 4294967040  ;;  %p3107_p6 = pmov %p3106_p7 }
  0x6f   : > { %2574 = dma.done.wait (%p3107_p6), [#allocation11], 512   ;;  %p3108_p12 = pmov %p3107_p6 }
  0x70   : > { %v2612_v0 = vmov 0.0   ;;  %vm2613_vm0 = vmmov 0   ;;  %v2335_v1 = vld [vmem:[#allocation10 + $0x8] sm:$0xff]   ;;  %v2336_v2 = vld [vmem:[#allocation10] sm:$0xff]   ;;  %v2337_v3 = vld [vmem:[#allocation9 + $0x8] sm:$0xff]   ;;  %vm386_vm1 = vcmask 261120  }
  0x71   : > { %2576 = vsyncadd (%p3108_p12), [#allocation11], 4294966784  ;;  %2065 = vmatprep.subr.bf16.mxu0 %v2612_v0  ;;  %2069 = vmatprep.mubr.msk.bf16.mxu0 %vm2613_vm0, %v2612_v0  ;;  %v2338_v4 = vld [vmem:[#allocation9] sm:$0xff]   ;;  %v369_v5 = vld [vmem:[%s318_s19] sm:$0xf]  ;;  %vm431_vm2 = vcmask 257024  }
  0x72   : > { %2073 = vmatprep.subr.bf16.mxu1 %v2612_v0  ;;  %2077 = vmatprep.mubr.msk.bf16.mxu1 %vm2613_vm0, %v2612_v0  ;;  %v440_v6 = vld [vmem:[%s2803_s11] sm:$0xf]  ;;  %s2614_s27 = smov 96   ;;  %vm504_vm3 = vcmask 31744   ;;  %s2615_s29 = smov 124   ;;  %vm565_vm4 = vcmask 1043456  }
  0x73   : > { %2066 = vmatpush3.bf16.msra.mxu0 %v2335_v1  ;;  %2074 = vmatpush3.bf16.msra.mxu1 %v2337_v3  ;;  %vm551_vm5 = vcmask 64512   ;;  %s2616_s12 = smov 120   ;;  %v2341_v51 = vld [vmem:[#allocation12] ss:$0 sps:$4 sm:$0xcc]   ;;  %vm739_vm6 = vcmask 1041408  }
  0x74   : > { %2067 = vmatprep.subr.bf16.mxu0 %v2612_v0  ;;  %2075 = vmatprep.subr.bf16.mxu1 %v2612_v0  ;;  %v735_v52 = vrot.slane %v2341_v51, 2  ;;  %s2617_s20 = smov 116   ;;  %v612_v54 = vld [vmem:[#allocation12] sm:$0x3]  ;;  %s2618_s2 = smov 112  }
  0x75   : > { %v787_v55 = vsel %vm739_vm6, %v612_v54, 0  ;;  %s2619_s3 = smov 108   ;;  %s2620_s18 = smov 104  }
  0x76   : > { %v741_v53 = vsel %vm739_vm6, %v735_v52, 0  ;;  %s2621_s16 = smov 100   ;;  %s1967_s28 = sshll.u32 %s2799_s4, 3 }
  0x77   : > { %2068 = vmatpush3.bf16.msra.mxu0 %v2336_v2  ;;  %2076 = vmatpush3.bf16.msra.mxu1 %v2338_v4  ;;  %s2007_s14 = sshll.u32 %s2595_s24, 7  ;;  %s363_s8 = scalar_lea.vmem [#allocation13], %s1967_s28 }
  0x78   : > { %2081 = vmatprep.subr.bf16.mxu0 %v2612_v0  ;;  %2087 = vmatprep.subr.bf16.mxu1 %v2612_v0  ;;  %s1819_s11 = sshll.u32 %s363_s8, 4  ;;  %s3031_s19 = scalar_lea.hbm %s3086_s6, %s2007_s14  ;;  %s3033_s11 = int_to_ptr.vmem [resolvable:$true] %s1819_s11 }
  0x79   : > { %s1805_s24 = scalar_lea.sflag [#allocation6], %s2799_s4 }
  0x7a   : > { %2070 = vmatmul.mubr.msk.bf16.vlgmr.msra.gmra.mxu0 %vm386_vm1, %v369_v5  ;;  %2078 = vmatmul.mubr.msk.bf16.vlgmr.msra.gmra.mxu1 %vm386_vm1, %v440_v6 }
  0x7b   : > { %2083 = vmatprep.mubr.msk.bf16.mxu0 %vm2613_vm0, %v2612_v0  ;;  %2089 = vmatprep.mubr.msk.bf16.mxu1 %vm2613_vm0, %v2612_v0 }
 0x13a   : > { %v424_v7 = vpop.f32.mrf.mxu0  ;;  %v495_v10 = vpop.f32.mrf.mxu1 }
 0x13b   : > { %v430_v8 = vpack.c.bf16 %v424_v7, %v424_v7  ;;  %v2846_v19 = vpack.c.bf16 %v495_v10, %v495_v10 }
 0x13c   : > { %v2071_v9 = vpop.f32.mrf.mxu0  ;;  %v2079_v12 = vpop.f32.mrf.mxu1 }
 0x13d   : > { %432 = vst.msk [vmem:[#allocation2] sm:$0xf] %vm431_vm2, %v430_v8  ;;  %436 = vrot.lane.b32.xlu1 %v430_v8, %s2614_s27  ;;  %s2511_s27 = scalar_lea.vmem %s3033_s11, 128 }
 0x13e   : > { %v427_v11 = vpop.f32.mrf.mxu0  ;;  %v498_v14 = vpop.f32.mrf.mxu1  ;;  %p2512_p0 = scmp.ne.s32.totalorder %s3033_s11, %s2511_s27 }
 0x140   : > { %v2072_v13 = vpop.f32.mrf.mxu0  ;;  %v2080_v15 = vpop.f32.mrf.mxu1  ;;  %p2513_p3 = pnand %p2512_p0, %p2754_p5 }
 0x142   : > { %p2514_p10 = pneg %p2513_p3 }
 0x144   : > { %v502_v16 = vld [vmem:[#allocation2] sm:$0xf] }
 0x145   : > { %v509_v17 = vsel %vm504_vm3, %v502_v16, 0  ;;  %v2841_v18 = vcombine.low %v502_v16, %v502_v16 }
 0x146   : > { %2082 = vmatpush3.bf16.xpose.msra.mxu0 %v509_v17 }
 0x147   : > { %619 = vrot.lane.b32.xlu0 %v2841_v18, %s2615_s29  ;;  %2093 = vmatprep.subr.bf16.mxu0 %v2612_v0 }
 0x14b   : > { %614 = vrot.lane.b32.xlu0 %v2846_v19, %s2615_s29 }
 0x14d   : > { %2084 = vmatmul.mubr.msk.bf16.vlgmr.msra.gmra.mxu0 %vm504_vm3, %v2846_v19 }
 0x14e   : > { %2095 = vmatprep.mubr.msk.bf16.mxu0 %vm2613_vm0, %v2612_v0 }
 0x1af   : > { %v437_v20 = vpop.permute.xlu1 %436 }
 0x1b0   : > { %439 = vst.msk [vmem:[#allocation3] sm:$0xf] %vm431_vm2, %v437_v20 }
 0x1b7   : > { %v503_v21 = vld [vmem:[#allocation3] sm:$0xf] }
 0x1b8   : > { %v567_v22 = vsel %vm565_vm4, %v503_v21, 0  ;;  %v2864_v36 = vcombine.low %v503_v21, %v503_v21 }
 0x1b9   : > { %2088 = vmatpush3.bf16.msra.mxu1 %v567_v22  ;;  %v620_v23 = vpop.permute.xlu0 %619 }
 0x1ba   : > { %v625_v24 = vsel %vm504_vm3, %v620_v23, 0  ;;  %2099 = vmatprep.subr.bf16.mxu1 %v2612_v0 }
 0x1bb   : > { %2094 = vmatpush3.bf16.xpose.msra.mxu0 %v625_v24 }
 0x1bc   : > { %2105 = vmatprep.subr.bf16.mxu0 %v2612_v0 }
 0x1bd   : > { %v615_v25 = vpop.permute.xlu0 %614 }
 0x1c2   : > { %2096 = vmatmul.mubr.msk.bf16.vlgmr.msra.gmra.mxu0 %vm504_vm3, %v615_v25 }
 0x1c3   : > { %2107 = vmatprep.mubr.msk.bf16.mxu0 %vm2613_vm0, %v2612_v0  ;;  %2106 = vmatpush3.bf16.msra.mxu0 %v741_v53 }
 0x1c4   : > { %2117 = vmatprep.subr.bf16.mxu0 %v2612_v0 }
 0x20d   : > { %v545_v26 = vpop.f32.mrf.mxu0 }
 0x20e   : > { %v552_v27 = vsel %vm551_vm5, %v545_v26, -inf }
 0x20f   : > { %553 = vmax.xlane.f32.xlu1 %v552_v27  ;;  %v2085_v28 = vpop.f32.mrf.mxu0 }
 0x211   : > { %v548_v29 = vpop.f32.mrf.mxu0 }
 0x213   : > { %v2086_v30 = vpop.f32.mrf.mxu0 }
 0x282   : > { %v661_v31 = vpop.f32.mrf.mxu0 }
 0x283   : > { %v667_v32 = vsel %vm551_vm5, %v661_v31, -inf }
 0x284   : > { %668 = vmax.xlane.f32.xlu0 %v667_v32  ;;  %v2097_v33 = vpop.f32.mrf.mxu0 }
 0x286   : > { %v664_v34 = vpop.f32.mrf.mxu0 }
 0x288   : > { %v2098_v35 = vpop.f32.mrf.mxu0 }
 0x298   : > { %v554_v37 = vpop.xlane.xlu1 %553 }
 0x299   : > { %v555_v38 = vsub.f32 %v545_v26, %v554_v37 }
 0x29a   : > { %680 = vrot.lane.b32.xlu0 %v2864_v36, %s2615_s29  ;;  %s2622_s29 = smov [#allocation13]  }
 0x29b   : > { %v556_v39 = vmul.f32 1.442695, %v555_v38 }
 0x29d   : > { %2345 = vpow2.f32 %v556_v39 }
 0x29e   : > { %829 = vrot.lane.b32.xlu0 %v2846_v19, %s2616_s12 }
 0x2aa   : > { %v2346_v40 = vpop.eup %2345 }
 0x2ab   : > { %v561_v41 = vpack.c.bf16 %v2346_v40, %v2346_v40  ;;  %v558_v50 = vsel %vm551_vm5, %v2346_v40, 0.0  ;;  %v940_v40 = vld [vmem:[#allocation12 + $0x4] sm:$0x3] }
 0x2ad   : > { %2090 = vmatmul.mubr.msk.bf16.vlgmr.msra.gmra.mxu1 %vm551_vm5, %v561_v41  ;;  %v945_v41 = vsel %vm739_vm6, %v940_v40, 0 }
 0x2ae   : > { %2101 = vmatprep.mubr.msk.bf16.mxu1 %vm2613_vm0, %v2612_v0 }
 0x30d   : > { %v669_v42 = vpop.xlane.xlu0 %668 }
 0x30e   : > { %v670_v43 = vsub.f32 %v661_v31, %v669_v42 }
 0x310   : > { %v671_v44 = vmul.f32 1.442695, %v670_v43 }
 0x311   : > { %v681_v45 = vpop.permute.xlu0 %680 }
 0x312   : > { %2347 = vpow2.f32 %v671_v44  ;;  %v686_v46 = vsel %vm565_vm4, %v681_v45, 0 }
 0x313   : > { %2100 = vmatpush3.bf16.msra.mxu1 %v686_v46 }
 0x314   : > { %2111 = vmatprep.subr.bf16.mxu1 %v2612_v0 }
 0x315   : > { %v830_v9 = vpop.permute.xlu0 %829 }
 0x31f   : > { %v2348_v47 = vpop.eup %2347 }
 0x320   : > { %v673_v48 = vsel %vm551_vm5, %v2348_v47, 0.0  ;;  %v676_v49 = vpack.c.bf16 %v2348_v47, %v2348_v47 }
 0x321   : > { %674 = vadd.xlane.f32.xlu1 %v673_v48 }
 0x322   : > { %2102 = vmatmul.mubr.msk.bf16.vlgmr.msra.gmra.mxu1 %vm551_vm5, %v676_v49 }
 0x323   : > { %2113 = vmatprep.mubr.msk.bf16.mxu1 %vm2613_vm0, %v2612_v0  ;;  %2112 = vmatpush3.bf16.msra.mxu1 %v787_v55 }
 0x324   : > { %2123 = vmatprep.subr.bf16.mxu1 %v2612_v0 }
 0x332   : > { %831 = vrot.lane.b32.xlu1 %v2841_v18, %s2616_s12 }
 0x356   : > { %559 = vadd.xlane.f32.xlu1 %v558_v50 }
 0x367   : > { %990 = vrot.lane.b32.xlu1 %v2841_v18, %s2617_s20 }
 0x36b   : > { %988 = vrot.lane.b32.xlu1 %v2846_v19, %s2617_s20 }
 0x36d   : > { %v603_v56 = vpop.f32.mrf.mxu1 }
 0x36f   : > { %v2091_v57 = vpop.f32.mrf.mxu1 }
 0x371   : > { %v606_v58 = vpop.f32.mrf.mxu1 }
 0x373   : > { %v2092_v59 = vpop.f32.mrf.mxu1 }
 0x3aa   : > { %v675_v60 = vpop.xlane.xlu1 %674 }
 0x3ab   : > { %2349 = vrcp.f32 %v675_v60 }
 0x3ae   : > { %v832_v61 = vpop.permute.xlu1 %831 }
 0x3af   : > { %v837_v6 = vsel %vm504_vm3, %v832_v61, 0 }
 0x3b8   : > { %v2350_v63 = vpop.eup %2349 }
 0x3df   : > { %v560_v62 = vpop.xlane.xlu1 %559 }
 0x3e0   : > { %2351 = vrcp.f32 %v560_v62 }
 0x3e2   : > { %v722_v1 = vpop.f32.mrf.mxu1 }
 0x3e3   : > { %v729_v2 = vmul.f32 %v2350_v63, %v722_v1  ;;  %v991_v34 = vpop.permute.xlu1 %990 }
 0x3e4   : > { %v2103_v3 = vpop.f32.mrf.mxu1  ;;  %v996_v38 = vsel %vm504_vm3, %v991_v34, 0 }
 0x3e5   : > { %v730_v4 = vpack.c.bf16 %v729_v2, %v729_v2 }
 0x3e6   : > { %v725_v5 = vpop.f32.mrf.mxu1 }
 0x3e7   : > { %2108 = vmatmul.mubr.msk.bf16.vlgmr.msra.gmra.mxu0 %vm504_vm3, %v730_v4  ;;  %v989_v39 = vpop.permute.xlu1 %988 }
 0x3e8   : > { %2118 = vmatpush3.bf16.xpose.msra.mxu0 %v837_v6  ;;  %v2104_v7 = vpop.f32.mrf.mxu1  ;;  %2119 = vmatprep.mubr.msk.bf16.mxu0 %vm2613_vm0, %v2612_v0 }
 0x3e9   : > { %2129 = vmatprep.subr.bf16.mxu0 %v2612_v0 }
 0x3ed   : > { %v2352_v8 = vpop.eup %2351 }
 0x3ee   : > { %v610_v10 = vmul.f32 %v2352_v8, %v603_v56  ;;  %v2342_v8 = vld [vmem:[#allocation12 + $0x4] ss:$0 sps:$4 sm:$0xcc]  }
 0x3ef   : > { %2120 = vmatmul.mubr.msk.bf16.vlgmr.msra.gmra.mxu0 %vm504_vm3, %v830_v9  ;;  %v1103_v9 = vrot.slane %v2342_v8, 2 }
 0x3f0   : > { %v611_v11 = vpack.c.bf16 %v610_v10, %v610_v10  ;;  %2131 = vmatprep.mubr.msk.bf16.mxu0 %vm2613_vm0, %v2612_v0  ;;  %2130 = vmatpush3.bf16.msra.mxu0 %v945_v41 }
 0x3f1   : > { %2141 = vmatprep.subr.bf16.mxu0 %v2612_v0  ;;  %v1108_v10 = vsel %vm739_vm6, %v1103_v9, 0 }
 0x3f2   : > { %2114 = vmatmul.mubr.msk.bf16.vlgmr.msra.gmra.mxu1 %vm504_vm3, %v611_v11 }
 0x3f3   : > { %2125 = vmatprep.mubr.msk.bf16.mxu1 %vm2613_vm0, %v2612_v0 }
 0x4a7   : > { %v777_v12 = vpop.f32.mrf.mxu0 }
 0x4a9   : > { %v2109_v13 = vpop.f32.mrf.mxu0 }
 0x4ab   : > { %v780_v14 = vpop.f32.mrf.mxu0 }
 0x4ad   : > { %v2110_v15 = vpop.f32.mrf.mxu0 }
 0x4af   : > { %v873_v16 = vpop.f32.mrf.mxu0 }
 0x4b0   : > { %v879_v17 = vsel %vm551_vm5, %v873_v16, -inf }
 0x4b1   : > { %880 = vmax.xlane.f32.xlu0 %v879_v17  ;;  %v2121_v20 = vpop.f32.mrf.mxu0 }
 0x4b2   : > { %v823_v21 = vpop.f32.mrf.mxu1 }
 0x4b3   : > { %v2902_v22 = vadd.f32 %v823_v21, %v777_v12  ;;  %v876_v23 = vpop.f32.mrf.mxu0 }
 0x4b4   : > { %v2115_v24 = vpop.f32.mrf.mxu1 }
 0x4b5   : > { %v2122_v25 = vpop.f32.mrf.mxu0 }
 0x4b6   : > { %v826_v26 = vpop.f32.mrf.mxu1 }
 0x4b8   : > { %v2116_v27 = vpop.f32.mrf.mxu1 }
 0x4c7   : > { %889 = vrot.lane.b32.xlu0 %v2864_v36, %s2616_s12  ;;  %s2515_s12 = sshll.u32 %s2622_s29, 4  ;;  %s2516_s12 = int_to_ptr.vmem [resolvable:$false] %s2515_s12 }
 0x4c8   : > { %p2518_p11 = scmp.lt.s32.totalorder %s3033_s11, %s2516_s12 }
 0x53a   : > { %v881_v28 = vpop.xlane.xlu0 %880 }
 0x53b   : > { %v882_v29 = vsub.f32 %v873_v16, %v881_v28 }
 0x53d   : > { %v883_v30 = vmul.f32 1.442695, %v882_v29 }
 0x53e   : > { %v890_v31 = vpop.permute.xlu0 %889 }
 0x53f   : > { %2353 = vpow2.f32 %v883_v30  ;;  %v895_v32 = vsel %vm565_vm4, %v890_v31, 0 }
 0x540   : > { %2124 = vmatpush3.bf16.msra.mxu1 %v895_v32 }
 0x541   : > { %2135 = vmatprep.subr.bf16.mxu1 %v2612_v0 }
 0x54c   : > { %v2354_v33 = vpop.eup %2353 }
 0x54d   : > { %v885_v35 = vsel %vm551_vm5, %v2354_v33, 0.0  ;;  %v888_v37 = vpack.c.bf16 %v2354_v33, %v2354_v33 }
 0x54e   : > { %886 = vadd.xlane.f32.xlu0 %v885_v35 }
 0x54f   : > { %2126 = vmatmul.mubr.msk.bf16.vlgmr.msra.gmra.mxu1 %vm551_vm5, %v888_v37 }
 0x550   : > { %2136 = vmatpush3.bf16.xpose.msra.mxu1 %v996_v38  ;;  %2137 = vmatprep.mubr.msk.bf16.mxu1 %vm2613_vm0, %v2612_v0 }
 0x551   : > { %2147 = vmatprep.subr.bf16.mxu1 %v2612_v0 }
 0x557   : > { %2138 = vmatmul.mubr.msk.bf16.vlgmr.msra.gmra.mxu1 %vm504_vm3, %v989_v39 }
 0x558   : > { %2149 = vmatprep.mubr.msk.bf16.mxu1 %vm2613_vm0, %v2612_v0  ;;  %2148 = vmatpush3.bf16.msra.mxu1 %v1108_v10 }
 0x559   : > { %2159 = vmatprep.subr.bf16.mxu1 %v2612_v0 }
 0x564   : > { %1048 = vrot.lane.b32.xlu0 %v2864_v36, %s2617_s20  ;;  %s2517_s20 = scalar_lea.vmem %s2516_s12, 256 }
 0x565   : > { %p2519_p9 = scmp.lt.s32.totalorder %s2517_s20, %s2511_s27 }
 0x567   : > { %p2520_p13 = por %p2519_p9, %p2518_p11 }
 0x568   : > { %1151 = vrot.lane.b32.xlu0 %v2846_v19, %s2618_s2 }
 0x569   : > { %p2521_p2 = pnand %p2520_p13, %p2514_p10 }
 0x5d7   : > { %v887_v42 = vpop.xlane.xlu0 %886 }
 0x5d8   : > { %2355 = vrcp.f32 %v887_v42 }
 0x5db   : > { %v1049_v46 = vpop.permute.xlu0 %1048 }
 0x5dc   : > { %v1054_v50 = vsel %vm565_vm4, %v1049_v46, 0 }
 0x5df   : > { %v1152_v2 = vpop.permute.xlu0 %1151 }
 0x5e5   : > { %v2356_v43 = vpop.eup %2355 }
 0x60f   : > { %v931_v44 = vpop.f32.mrf.mxu1 }
 0x610   : > { %v938_v45 = vmul.f32 %v2356_v43, %v931_v44  ;;  %v1262_v43 = vld [vmem:[#allocation12 + $0x8] sm:$0x3] }
 0x611   : > { %v2127_v47 = vpop.f32.mrf.mxu1  ;;  %v1267_v44 = vsel %vm739_vm6, %v1262_v43, 0 }
 0x612   : > { %v939_v48 = vpack.c.bf16 %v938_v45, %v938_v45 }
 0x613   : > { %v934_v49 = vpop.f32.mrf.mxu1 }
 0x614   : > { %2132 = vmatmul.mubr.msk.bf16.vlgmr.msra.gmra.mxu0 %vm504_vm3, %v939_v48 }
 0x615   : > { %2142 = vmatpush3.bf16.msra.mxu0 %v1054_v50  ;;  %v2128_v51 = vpop.f32.mrf.mxu1  ;;  %2143 = vmatprep.mubr.msk.bf16.mxu0 %vm2613_vm0, %v2612_v0 }
 0x616   : > { %2153 = vmatprep.subr.bf16.mxu0 %v2612_v0 }
 0x617   : > { %v1032_v52 = vpop.f32.mrf.mxu1 }
 0x618   : > { %v1038_v53 = vsel %vm551_vm5, %v1032_v52, -inf }
 0x619   : > { %1039 = vmax.xlane.f32.xlu1 %v1038_v53  ;;  %v2139_v54 = vpop.f32.mrf.mxu1 }
 0x61b   : > { %v1035_v55 = vpop.f32.mrf.mxu1 }
 0x61d   : > { %v2140_v56 = vpop.f32.mrf.mxu1 }
 0x62a   : > { %1153 = vrot.lane.b32.xlu1 %v2841_v18, %s2618_s2 }
 0x6a2   : > { %v1040_v57 = vpop.xlane.xlu1 %1039 }
 0x6a3   : > { %v1041_v58 = vsub.f32 %v1032_v52, %v1040_v57 }
 0x6a5   : > { %v1042_v59 = vmul.f32 1.442695, %v1041_v58 }
 0x6a6   : > { %v1154_v61 = vpop.permute.xlu1 %1153 }
 0x6a7   : > { %2357 = vpow2.f32 %v1042_v59  ;;  %v1159_v1 = vsel %vm504_vm3, %v1154_v61, 0 }
 0x6b4   : > { %v2358_v60 = vpop.eup %2357 }
 0x6b5   : > { %v1044_v62 = vsel %vm551_vm5, %v2358_v60, 0.0  ;;  %v1047_v63 = vpack.c.bf16 %v2358_v60, %v2358_v60 }
 0x6b6   : > { %1045 = vadd.xlane.f32.xlu1 %v1044_v62 }
 0x6b7   : > { %2144 = vmatmul.mubr.msk.bf16.vlgmr.msra.gmra.mxu0 %vm551_vm5, %v1047_v63 }
 0x6b8   : > { %2154 = vmatpush3.bf16.xpose.msra.mxu0 %v1159_v1  ;;  %2155 = vmatprep.mubr.msk.bf16.mxu0 %vm2613_vm0, %v2612_v0 }
 0x6b9   : > { %2165 = vmatprep.subr.bf16.mxu0 %v2612_v0 }
 0x6bf   : > { %2156 = vmatmul.mubr.msk.bf16.vlgmr.msra.gmra.mxu0 %vm504_vm3, %v1152_v2 }
 0x6c0   : > { %2167 = vmatprep.mubr.msk.bf16.mxu0 %vm2613_vm0, %v2612_v0  ;;  %2166 = vmatpush3.bf16.msra.mxu0 %v1267_v44  ;;  %v1584_v44 = vld [vmem:[#allocation12 + $0xc] sm:$0x3] }
 0x6c1   : > { %2177 = vmatprep.subr.bf16.mxu0 %v2612_v0 }
 0x6c7   : > { %1312 = vrot.lane.b32.xlu1 %v2841_v18, %s2619_s3 }
 0x6cb   : > { %1310 = vrot.lane.b32.xlu1 %v2846_v19, %s2619_s3 }
 0x6d4   : > { %v981_v3 = vpop.f32.mrf.mxu0 }
 0x6d5   : > { %v987_v4 = vadd.f32 %v981_v3, %v2902_v22 }
 0x6d6   : > { %v2133_v5 = vpop.f32.mrf.mxu0 }
 0x6d8   : > { %v984_v6 = vpop.f32.mrf.mxu0 }
 0x6da   : > { %v2134_v7 = vpop.f32.mrf.mxu0 }
 0x73f   : > { %v1046_v11 = vpop.xlane.xlu1 %1045 }
 0x740   : > { %2359 = vrcp.f32 %v1046_v11  ;;  %v2343_v11 = vld [vmem:[#allocation12 + $0x8] ss:$0 sps:$4 sm:$0xcc]  }
 0x743   : > { %v1313_v32 = vpop.permute.xlu1 %1312 }
 0x744   : > { %v1318_v35 = vsel %vm504_vm3, %v1313_v32, 0 }
 0x747   : > { %v1311_v37 = vpop.permute.xlu1 %1310 }
 0x74d   : > { %v2360_v12 = vpop.eup %2359 }
 0x777   : > { %v1090_v13 = vpop.f32.mrf.mxu0 }
 0x778   : > { %v1097_v14 = vmul.f32 %v2360_v12, %v1090_v13  ;;  %v1425_v12 = vrot.slane %v2343_v11, 2 }
 0x779   : > { %v2145_v15 = vpop.f32.mrf.mxu0 }
 0x77a   : > { %v1098_v16 = vpack.c.bf16 %v1097_v14, %v1097_v14  ;;  %v1430_v13 = vsel %vm739_vm6, %v1425_v12, 0 }
 0x77b   : > { %v1093_v17 = vpop.f32.mrf.mxu0 }
 0x77c   : > { %2150 = vmatmul.mubr.msk.bf16.vlgmr.msra.gmra.mxu1 %vm504_vm3, %v1098_v16 }
 0x77d   : > { %v2146_v20 = vpop.f32.mrf.mxu0  ;;  %2161 = vmatprep.mubr.msk.bf16.mxu1 %vm2613_vm0, %v2612_v0 }
 0x77f   : > { %v1195_v21 = vpop.f32.mrf.mxu0 }
 0x780   : > { %v1201_v22 = vsel %vm551_vm5, %v1195_v21, -inf }
 0x781   : > { %1202 = vmax.xlane.f32.xlu0 %v1201_v22  ;;  %v2157_v23 = vpop.f32.mrf.mxu0 }
 0x783   : > { %v1198_v24 = vpop.f32.mrf.mxu0 }
 0x785   : > { %v2158_v25 = vpop.f32.mrf.mxu0 }
 0x797   : > { %1211 = vrot.lane.b32.xlu0 %v2864_v36, %s2618_s2 }
 0x80a   : > { %v1203_v26 = vpop.xlane.xlu0 %1202 }
 0x80b   : > { %v1204_v27 = vsub.f32 %v1195_v21, %v1203_v26 }
 0x80d   : > { %v1205_v28 = vmul.f32 1.442695, %v1204_v27 }
 0x80e   : > { %v1212_v29 = vpop.permute.xlu0 %1211 }
 0x80f   : > { %2361 = vpow2.f32 %v1205_v28  ;;  %v1217_v30 = vsel %vm565_vm4, %v1212_v29, 0 }
 0x810   : > { %2160 = vmatpush3.bf16.msra.mxu1 %v1217_v30 }
 0x811   : > { %2171 = vmatprep.subr.bf16.mxu1 %v2612_v0 }
 0x81c   : > { %v2362_v31 = vpop.eup %2361 }
 0x81d   : > { %v1207_v33 = vsel %vm551_vm5, %v2362_v31, 0.0  ;;  %v1210_v34 = vpack.c.bf16 %v2362_v31, %v2362_v31 }
 0x81e   : > { %1208 = vadd.xlane.f32.xlu0 %v1207_v33 }
 0x81f   : > { %2162 = vmatmul.mubr.msk.bf16.vlgmr.msra.gmra.mxu1 %vm551_vm5, %v1210_v34 }
 0x820   : > { %2172 = vmatpush3.bf16.xpose.msra.mxu1 %v1318_v35  ;;  %2173 = vmatprep.mubr.msk.bf16.mxu1 %vm2613_vm0, %v2612_v0 }
 0x821   : > { %2183 = vmatprep.subr.bf16.mxu1 %v2612_v0 }
 0x827   : > { %2174 = vmatmul.mubr.msk.bf16.vlgmr.msra.gmra.mxu1 %vm504_vm3, %v1311_v37 }
 0x828   : > { %2185 = vmatprep.mubr.msk.bf16.mxu1 %vm2613_vm0, %v2612_v0  ;;  %2184 = vmatpush3.bf16.msra.mxu1 %v1430_v13 }
 0x829   : > { %2195 = vmatprep.subr.bf16.mxu1 %v2612_v0 }
 0x834   : > { %1370 = vrot.lane.b32.xlu0 %v2864_v36, %s2619_s3 }
 0x838   : > { %1473 = vrot.lane.b32.xlu0 %v2846_v19, %s2620_s18 }
 0x83c   : > { %v1144_v38 = vpop.f32.mrf.mxu1 }
 0x83d   : > { %v1150_v39 = vadd.f32 %v1144_v38, %v987_v4 }
 0x83e   : > { %v2151_v40 = vpop.f32.mrf.mxu1 }
 0x840   : > { %v1147_v41 = vpop.f32.mrf.mxu1 }
 0x842   : > { %v2152_v42 = vpop.f32.mrf.mxu1 }
 0x8a7   : > { %v1209_v45 = vpop.xlane.xlu0 %1208 }
 0x8a8   : > { %2363 = vrcp.f32 %v1209_v45  ;;  %v1589_v45 = vsel %vm739_vm6, %v1584_v44, 0 }
 0x8ab   : > { %v1371_v49 = vpop.permute.xlu0 %1370 }
 0x8ac   : > { %v1376_v53 = vsel %vm565_vm4, %v1371_v49, 0 }
 0x8af   : > { %v1474_v5 = vpop.permute.xlu0 %1473 }
 0x8b5   : > { %v2364_v46 = vpop.eup %2363 }
 0x8df   : > { %v1253_v47 = vpop.f32.mrf.mxu1 }
 0x8e0   : > { %v1260_v48 = vmul.f32 %v2364_v46, %v1253_v47 }
 0x8e1   : > { %v2163_v50 = vpop.f32.mrf.mxu1 }
 0x8e2   : > { %v1261_v51 = vpack.c.bf16 %v1260_v48, %v1260_v48 }
 0x8e3   : > { %v1256_v52 = vpop.f32.mrf.mxu1 }
 0x8e4   : > { %2168 = vmatmul.mubr.msk.bf16.vlgmr.msra.gmra.mxu0 %vm504_vm3, %v1261_v51 }
 0x8e5   : > { %2178 = vmatpush3.bf16.msra.mxu0 %v1376_v53  ;;  %v2164_v54 = vpop.f32.mrf.mxu1  ;;  %2179 = vmatprep.mubr.msk.bf16.mxu0 %vm2613_vm0, %v2612_v0 }
 0x8e6   : > { %2189 = vmatprep.subr.bf16.mxu0 %v2612_v0 }
 0x8e7   : > { %v1354_v55 = vpop.f32.mrf.mxu1 }
 0x8e8   : > { %v1360_v56 = vsel %vm551_vm5, %v1354_v55, -inf }
 0x8e9   : > { %1361 = vmax.xlane.f32.xlu1 %v1360_v56  ;;  %v2175_v57 = vpop.f32.mrf.mxu1 }
 0x8eb   : > { %v1357_v58 = vpop.f32.mrf.mxu1 }
 0x8ed   : > { %v2176_v59 = vpop.f32.mrf.mxu1 }
 0x8fa   : > { %1475 = vrot.lane.b32.xlu1 %v2841_v18, %s2620_s18 }
 0x972   : > { %v1362_v60 = vpop.xlane.xlu1 %1361 }
 0x973   : > { %v1363_v61 = vsub.f32 %v1354_v55, %v1362_v60 }
 0x975   : > { %v1364_v62 = vmul.f32 1.442695, %v1363_v61 }
 0x976   : > { %v1476_v1 = vpop.permute.xlu1 %1475 }
 0x977   : > { %2365 = vpow2.f32 %v1364_v62  ;;  %v1481_v4 = vsel %vm504_vm3, %v1476_v1, 0 }
 0x984   : > { %v2366_v63 = vpop.eup %2365 }
 0x985   : > { %v1366_v2 = vsel %vm551_vm5, %v2366_v63, 0.0  ;;  %v1369_v3 = vpack.c.bf16 %v2366_v63, %v2366_v63 }
 0x986   : > { %1367 = vadd.xlane.f32.xlu1 %v1366_v2 }
 0x987   : > { %2180 = vmatmul.mubr.msk.bf16.vlgmr.msra.gmra.mxu0 %vm551_vm5, %v1369_v3  ;;  %v2344_v3 = vld [vmem:[#allocation12 + $0xc] ss:$0 sps:$4 sm:$0xcc]  }
 0x988   : > { %2190 = vmatpush3.bf16.xpose.msra.mxu0 %v1481_v4  ;;  %2191 = vmatprep.mubr.msk.bf16.mxu0 %vm2613_vm0, %v2612_v0 }
 0x989   : > { %2201 = vmatprep.subr.bf16.mxu0 %v2612_v0 }
 0x98f   : > { %2192 = vmatmul.mubr.msk.bf16.vlgmr.msra.gmra.mxu0 %vm504_vm3, %v1474_v5 }
 0x990   : > { %2203 = vmatprep.mubr.msk.bf16.mxu0 %vm2613_vm0, %v2612_v0  ;;  %2202 = vmatpush3.bf16.msra.mxu0 %v1589_v45 }
 0x991   : > { %2213 = vmatprep.subr.bf16.mxu0 %v2612_v0 }
 0x997   : > { %1634 = vrot.lane.b32.xlu1 %v2841_v18, %s2621_s16 }
 0x99b   : > { %1632 = vrot.lane.b32.xlu1 %v2846_v19, %s2621_s16 }
 0x9a4   : > { %v1303_v6 = vpop.f32.mrf.mxu0 }
 0x9a5   : > { %v1309_v7 = vadd.f32 %v1303_v6, %v1150_v39 }
 0x9a6   : > { %v2169_v8 = vpop.f32.mrf.mxu0 }
 0x9a8   : > { %v1306_v9 = vpop.f32.mrf.mxu0 }
 0x9aa   : > { %v2170_v10 = vpop.f32.mrf.mxu0 }
 0xa0f   : > { %v1368_v14 = vpop.xlane.xlu1 %1367 }
 0xa10   : > { %2367 = vrcp.f32 %v1368_v14 }
 0xa13   : > { %v1635_v33 = vpop.permute.xlu1 %1634 }
 0xa14   : > { %v1640_v37 = vsel %vm504_vm3, %v1635_v33, 0 }
 0xa17   : > { %v1633_v38 = vpop.permute.xlu1 %1632 }
 0xa1d   : > { %v2368_v15 = vpop.eup %2367 }
 0xa47   : > { %v1412_v16 = vpop.f32.mrf.mxu0 }
 0xa48   : > { %v1419_v18 = vmul.f32 %v2368_v15, %v1412_v16 }
 0xa49   : > { %v2181_v17 = vpop.f32.mrf.mxu0 }
 0xa4a   : > { %v1420_v20 = vpack.c.bf16 %v1419_v18, %v1419_v18 }
 0xa4b   : > { %v1415_v19 = vpop.f32.mrf.mxu0 }
 0xa4c   : > { %2186 = vmatmul.mubr.msk.bf16.vlgmr.msra.gmra.mxu1 %vm504_vm3, %v1420_v20  ;;  %v2005_v20 = vld [vmem:[%s3085_s5] ss:$0 sm:$0xff] }
 0xa4d   : > { %v2182_v21 = vpop.f32.mrf.mxu0  ;;  %2197 = vmatprep.mubr.msk.bf16.mxu1 %vm2613_vm0, %v2612_v0 }
 0xa4f   : > { %v1517_v22 = vpop.f32.mrf.mxu0 }
 0xa50   : > { %v1523_v23 = vsel %vm551_vm5, %v1517_v22, -inf }
 0xa51   : > { %1524 = vmax.xlane.f32.xlu0 %v1523_v23  ;;  %v2193_v24 = vpop.f32.mrf.mxu0 }
 0xa53   : > { %v1520_v25 = vpop.f32.mrf.mxu0 }
 0xa55   : > { %v2194_v26 = vpop.f32.mrf.mxu0 }
 0xa67   : > { %1533 = vrot.lane.b32.xlu0 %v2864_v36, %s2620_s18 }
 0xada   : > { %v1525_v27 = vpop.xlane.xlu0 %1524 }
 0xadb   : > { %v1526_v28 = vsub.f32 %v1517_v22, %v1525_v27 }
 0xadd   : > { %v1527_v29 = vmul.f32 1.442695, %v1526_v28 }
 0xade   : > { %v1534_v30 = vpop.permute.xlu0 %1533 }
 0xadf   : > { %2369 = vpow2.f32 %v1527_v29  ;;  %v1539_v31 = vsel %vm565_vm4, %v1534_v30, 0 }
 0xae0   : > { %2196 = vmatpush3.bf16.msra.mxu1 %v1539_v31 }
 0xae1   : > { %2207 = vmatprep.subr.bf16.mxu1 %v2612_v0 }
 0xaec   : > { %v2370_v32 = vpop.eup %2369 }
 0xaed   : > { %v1529_v34 = vsel %vm551_vm5, %v2370_v32, 0.0  ;;  %v1532_v35 = vpack.c.bf16 %v2370_v32, %v2370_v32 }
 0xaee   : > { %1530 = vadd.xlane.f32.xlu0 %v1529_v34 }
 0xaef   : > { %2198 = vmatmul.mubr.msk.bf16.vlgmr.msra.gmra.mxu1 %vm551_vm5, %v1532_v35 }
 0xaf0   : > { %2208 = vmatpush3.bf16.xpose.msra.mxu1 %v1640_v37  ;;  %2209 = vmatprep.mubr.msk.bf16.mxu1 %vm2613_vm0, %v2612_v0 }
 0xaf1   : > { %2219 = vmatprep.subr.bf16.mxu1 %v2612_v0 }
 0xaf7   : > { %2210 = vmatmul.mubr.msk.bf16.vlgmr.msra.gmra.mxu1 %vm504_vm3, %v1633_v38 }
 0xaf8   : > { %2221 = vmatprep.mubr.msk.bf16.mxu1 %vm2613_vm0, %v2612_v0 }
 0xb04   : > { %1692 = vrot.lane.b32.xlu0 %v2864_v36, %s2621_s16 }
 0xb0c   : > { %v1466_v39 = vpop.f32.mrf.mxu1 }
 0xb0d   : > { %v1472_v40 = vadd.f32 %v1466_v39, %v1309_v7 }
 0xb0e   : > { %v2187_v41 = vpop.f32.mrf.mxu1 }
 0xb10   : > { %v1469_v42 = vpop.f32.mrf.mxu1 }
 0xb12   : > { %v2188_v43 = vpop.f32.mrf.mxu1 }
 0xb77   : > { %v1531_v46 = vpop.xlane.xlu0 %1530 }
 0xb78   : > { %2371 = vrcp.f32 %v1531_v46 }
 0xb7b   : > { %v1693_v50 = vpop.permute.xlu0 %1692 }
 0xb7c   : > { %v1698_v53 = vsel %vm565_vm4, %v1693_v50, 0 }
 0xb85   : > { %v2372_v47 = vpop.eup %2371 }
 0xbaf   : > { %v1575_v48 = vpop.f32.mrf.mxu1 }
 0xbb0   : > { %v1582_v49 = vmul.f32 %v2372_v47, %v1575_v48 }
 0xbb1   : > { %v2199_v51 = vpop.f32.mrf.mxu1 }
 0xbb2   : > { %v1583_v52 = vpack.c.bf16 %v1582_v49, %v1582_v49 }
 0xbb3   : > { %v1578_v36 = vpop.f32.mrf.mxu1 }
 0xbb4   : > { %2204 = vmatmul.mubr.msk.bf16.vlgmr.msra.gmra.mxu0 %vm504_vm3, %v1583_v52 }
 0xbb5   : > { %2214 = vmatpush3.bf16.msra.mxu0 %v1698_v53  ;;  %v2200_v54 = vpop.f32.mrf.mxu1  ;;  %2215 = vmatprep.mubr.msk.bf16.mxu0 %vm2613_vm0, %v2612_v0  ;;  %v1747_v0 = vrot.slane %v2344_v3, 2 }
 0xbb7   : > { %v1676_v55 = vpop.f32.mrf.mxu1  ;;  %v1752_v4 = vsel %vm739_vm6, %v1747_v0, 0 }
 0xbb8   : > { %v1682_v56 = vsel %vm551_vm5, %v1676_v55, -inf  ;;  %2220 = vmatpush3.bf16.msra.mxu1 %v1752_v4 }
 0xbb9   : > { %1683 = vmax.xlane.f32.xlu1 %v1682_v56  ;;  %v2211_v57 = vpop.f32.mrf.mxu1 }
 0xbbb   : > { %v1679_v58 = vpop.f32.mrf.mxu1 }
 0xbbd   : > { %v2212_v59 = vpop.f32.mrf.mxu1 }
 0xc42   : > { %v1684_v60 = vpop.xlane.xlu1 %1683 }
 0xc43   : > { %v1685_v61 = vsub.f32 %v1676_v55, %v1684_v60 }
 0xc45   : > { %v1686_v62 = vmul.f32 1.442695, %v1685_v61 }
 0xc47   : > { %2373 = vpow2.f32 %v1686_v62 }
 0xc54   : > { %v2374_v63 = vpop.eup %2373 }
 0xc55   : > { %v1688_v1 = vsel %vm551_vm5, %v2374_v63, 0.0  ;;  %v1691_v2 = vpack.c.bf16 %v2374_v63, %v2374_v63 }
 0xc56   : > { %1689 = vadd.xlane.f32.xlu1 %v1688_v1 }
 0xc57   : > { %2216 = vmatmul.mubr.msk.bf16.vlgmr.msra.gmra.mxu0 %vm551_vm5, %v1691_v2 }
 0xc74   : > { %v1625_v5 = vpop.f32.mrf.mxu0 }
 0xc75   : > { %v1631_v6 = vadd.f32 %v1625_v5, %v1472_v40 }
 0xc76   : > { %v2205_v7 = vpop.f32.mrf.mxu0 }
 0xc78   : > { %v1628_v8 = vpop.f32.mrf.mxu0 }
 0xc7a   : > { %v2206_v9 = vpop.f32.mrf.mxu0 }
 0xcdf   : > { %v1690_v10 = vpop.xlane.xlu1 %1689 }
 0xce0   : > { %2375 = vrcp.f32 %v1690_v10 }
 0xced   : > { %v2376_v11 = vpop.eup %2375 }
 0xd17   : > { %v1734_v12 = vpop.f32.mrf.mxu0 }
 0xd18   : > { %v1741_v13 = vmul.f32 %v2376_v11, %v1734_v12 }
 0xd19   : > { %v2217_v14 = vpop.f32.mrf.mxu0 }
 0xd1a   : > { %v1742_v15 = vpack.c.bf16 %v1741_v13, %v1741_v13 }
 0xd1b   : > { %v1737_v16 = vpop.f32.mrf.mxu0 }
 0xd1c   : > { %2222 = vmatmul.mubr.msk.bf16.vlgmr.msra.gmra.mxu1 %vm504_vm3, %v1742_v15 }
 0xd1d   : > { %v2218_v18 = vpop.f32.mrf.mxu0 }
 0xddc   : > { %v1788_v17 = vpop.f32.mrf.mxu1 }
 0xddd   : > { %v1794_v19 = vadd.f32 %v1788_v17, %v1631_v6 }
 0xdde   : > { %v2223_v21 = vpop.f32.mrf.mxu1 }
 0xddf   : > { %v1802_v22 = vadd.f32 %v2005_v20, %v1794_v19 }
 0xde0   : > { %v1791_v23 = vpop.f32.mrf.mxu1 }
 0xde1   : > { %1803 = vst.msk [vmem:[%s363_s8] sm:$0xff] %vm386_vm1, %v1802_v22 }
 0xde2   : > { %v2224_v24 = vpop.f32.mrf.mxu1 }
 0xde3   : > { %2524 = shalt.err (!%p2521_p2)
}
 0xde4   : > { %s2525_s2 = scalar_lea.hbm %s3031_s19, 128  ;;  %s2529_s18 = scalar_lea.hbm %s3086_s6, 256 }
 0xde5   : > { %p2526_p4 = scmp.ne.s32.totalorder %s3031_s19, %s2525_s2  ;;  %p2530_p7 = scmp.lt.s32.totalorder %s3031_s19, %s3086_s6 }
 0xde6   : > { %p2531_p6 = scmp.lt.s32.totalorder %s2529_s18, %s2525_s2 }
 0xde7   : > { %p2527_p1 = pnand %p2526_p4, %p2754_p5 }
 0xde8   : > { %p2532_p12 = por %p2531_p6, %p2530_p7 }
 0xde9   : > { %p2528_p8 = pneg %p2527_p1 }
 0xdeb   : > { %p2533_p0 = pnand %p2532_p12, %p2528_p8 }
 0xded   : > { %2536 = shalt.err (!%p2533_p0)
}
 0xdee   : > { %2241 = dma.vmem_to_hbm [thread:$0]  (%p2754_p5), %s3033_s11, 128, %s3031_s19, %s1805_s24  }
 0xdef PF: > { %s1831_s9 = sand.u32 1, %s2583_s21   ;;  %p3109_p3 = scmp.ne.s32.totalorder %s3094_s30, 0 }
 0xdf0   : > { %p3110_p10 = scmp.ge.s32.totalorder %s2603_s26, 2  ;;  %s1832_s0 = scalar_lea.sflag [#allocation6], %s1831_s9 }
 0xdf2   : > { %p2261_p11 = pnand %p3110_p10, %p3109_p3 }
 0xdf4   : > { %p2262_p9 = pneg %p2261_p11 }
 0xdf6   : > { %2578 = dma.done.wait (%p2262_p9), %s1832_s0, 128  }
 0xdf7   : > { %2580 = vsyncadd (%p2262_p9), %s1832_s0, 4294967168  ;;  %s26_s26 = sadd.s32 1, %s2603_s26   ;;  %s3111_s21 = smov %s2587_s22 }
 0xdf8   : > { %p23_p13 = scmp.ge.s32.totalorder %s26_s26, 4   ;;  %s3112_s22 = smov %s2591_s23 }
 0xdf9   : > { %s3113_s23 = smov %s2766_s17  ;;  %s3114_s24 = smov %s2599_s25 }
 0xdfa   : > { %s3115_s25 = smov %s3117_s15  ;;  %25 = sbr.rel (!%p23_p13) target bundleno = 14 (0xe), region = 118 }
 0xdff   :  { %1837 = vsyncpa [#allocation5], 1 }
 0xe00   :  { %1839 = vsyncpa [#allocation5 + $0x1], 1 }
 0xe01   :  { %1840 = vsyncpa [#allocation8], 1 }
 0xe02   :  { %1842 = vsyncpa [#allocation8 + $0x1], 1 }
 0xe03   :  { %1843 = vsyncpa [#allocation11], 1 }
 0xe04   :  { %1844 = vsyncpa [#allocation6], 1 }
 0xe05   :  { %1846 = vsyncpa [#allocation6 + $0x1], 1 }

</bundles_post_ra>
